<compile_context>
chip_gen: v6e
topology: v6e:2x2x1
jax: 0.10.0
libtpu: 0.0.40
codegen_flags: <defaults>
</compile_context>

<pallas_src>
import numpy as np
import jax
import jax.numpy as jnp
from jax.experimental import pallas as pl
from jax.experimental.pallas import tpu as pltpu

_EPS = 1e-5

# ---- row layout of the packed weight slab (all 128 columns, f32) -------------
_W_E1S = (0, 48)       # EdgeBlock Lin(96,128), src half
_W_E1D = (48, 96)      # EdgeBlock Lin(96,128), dest half
_W_E2 = (96, 224)      # EdgeBlock Lin(128,128)
_W_N1X = (224, 272)    # node_mlp_1 Lin(176,128), x[row] part
_W_N1E = (272, 400)    # node_mlp_1 Lin(176,128), edge_attr part
_W_N1B = (400, 528)    # node_mlp_1 Lin(128,128)
_W_N2X = (528, 576)    # node_mlp_2 Lin(176,128), x part
_W_N2A = (576, 704)    # node_mlp_2 Lin(176,128), agg part
_W_N2B = (704, 832)    # node_mlp_2 Lin(128,128)
_W_G1 = (832, 960)     # GlobalBlock Lin(128,128)
_W_G2 = (960, 1088)    # GlobalBlock Lin(128,6), zero-padded to 128 cols
_W_ROWS = 1088

# ---- row layout of the packed bias/gain slab [16, 128] ----------------------
(_V_BE1, _V_GE1, _V_BBE1, _V_BE2,
 _V_BN1A, _V_GN1, _V_BBN1, _V_BN1B,
 _V_BN2A, _V_GN2, _V_BBN2, _V_BN2B,
 _V_BG1, _V_GG, _V_BBG, _V_BG2) = range(16)


def interaction_network_kernel(x_ref, srow_ref, scol_ref, sbat_ref,
                               icc_ref, ibc_ref, bn0_ref, w_ref, v_ref,
                               u_ref):
    def W(lo_hi):
        lo, hi = lo_hi
        return w_ref[lo:hi, :]                      # static, sublane-aligned slice

    vp = v_ref[...]                                 # [16, 128], one load

    def V(i):
        return vp[i:i + 1, :]

    def bn_relu(h, g, bt):
        # BatchNorm1d training mode (biased var), fused to a single FMA per element.
        mu = jnp.mean(h, axis=0, keepdims=True)
        ms = jnp.mean(h * h, axis=0, keepdims=True)
        scale = g * jax.lax.rsqrt(ms - mu * mu + _EPS)
        shift = bt - mu * scale
        return jnp.maximum(h * scale + shift, 0.0)

    # ---- input BatchNorm1d(48), training statistics over all nodes ----
    x = x_ref[...]                                  # [N, 48]
    bn0 = bn0_ref[...]                              # [2, 48]  (row0=gamma, row1=beta)
    mu = jnp.mean(x, axis=0, keepdims=True)
    ms = jnp.mean(x * x, axis=0, keepdims=True)
    scale = bn0[0:1, :] * jax.lax.rsqrt(ms - mu * mu + _EPS)
    xb = x * scale + (bn0[1:2, :] - mu * scale)     # [N, 48]

    # ---- gather x[row], x[col] via one-hot matmuls (bf16 one-hot, exact 0/1) ----
    srow = srow_ref[...].astype(jnp.float32)        # [E, N]
    scol = scol_ref[...].astype(jnp.float32)        # [E, N]
    xs = jnp.dot(srow, xb, preferred_element_type=jnp.float32)   # [E, 48]
    xd = jnp.dot(scol, xb, preferred_element_type=jnp.float32)   # [E, 48]

    # ---- EdgeBlock: Lin(96,128) as split partial matmuls (no lane concat) ----
    h = (jnp.dot(xs, W(_W_E1S), preferred_element_type=jnp.float32)
         + jnp.dot(xd, W(_W_E1D), preferred_element_type=jnp.float32)
         + V(_V_BE1))
    h = bn_relu(h, V(_V_GE1), V(_V_BBE1))
    edge_attr = (jnp.dot(h, W(_W_E2), preferred_element_type=jnp.float32)
                 + V(_V_BE2))                                      # [E, 128]

    # ---- NodeBlock node_mlp_1 on (x[row], edge_attr) ----
    h = (jnp.dot(xs, W(_W_N1X), preferred_element_type=jnp.float32)
         + jnp.dot(edge_attr, W(_W_N1E), preferred_element_type=jnp.float32)
         + V(_V_BN1A))
    h = bn_relu(h, V(_V_GN1), V(_V_BBN1))
    h = jnp.dot(h, W(_W_N1B), preferred_element_type=jnp.float32) + V(_V_BN1B)

    # scatter_mean over destination node: transposed contraction on the MXU,
    # mean via wrapper-precomputed reciprocal counts (no divides in kernel).
    agg = jax.lax.dot_general(scol, h, (((0,), (0,)), ((), ())),
                              preferred_element_type=jnp.float32)  # [N, 128]
    agg = agg * icc_ref[...]

    # ---- NodeBlock node_mlp_2 on (x, agg) ----
    h = (jnp.dot(xb, W(_W_N2X), preferred_element_type=jnp.float32)
         + jnp.dot(agg, W(_W_N2A), preferred_element_type=jnp.float32)
         + V(_V_BN2A))
    h = bn_relu(h, V(_V_GN2), V(_V_BBN2))
    xnode = jnp.dot(h, W(_W_N2B), preferred_element_type=jnp.float32) + V(_V_BN2B)

    # ---- GlobalBlock: scatter_mean over graph id, MLP -> lane-dense [B, 128] ----
    sbat = sbat_ref[...].astype(jnp.float32)                       # [N, B]
    gmean = jax.lax.dot_general(sbat, xnode, (((0,), (0,)), ((), ())),
                                preferred_element_type=jnp.float32) * ibc_ref[...]
    h = jnp.dot(gmean, W(_W_G1), preferred_element_type=jnp.float32) + V(_V_BG1)
    h = bn_relu(h, V(_V_GG), V(_V_BBG))
    u_ref[...] = (jnp.dot(h, W(_W_G2), preferred_element_type=jnp.float32)
                  + V(_V_BG2))                                     # [B, 128]


def _pack_params(params):
    (g0, b0,
     We1, be1, ge1, bbe1, We2, be2,
     Wn1a, bn1a, gn1, bbn1, Wn1b, bn1b,
     Wn2a, bn2a, gn2, bbn2, Wn2b, bn2b,
     Wg1, bg1, gg, bbg, Wg2, bg2) = params

    Wg2p = jnp.zeros((128, 128), jnp.float32).at[:, :6].set(Wg2)
    bg2p = jnp.zeros((1, 128), jnp.float32).at[:, :6].set(bg2)

    wpack = jnp.concatenate([
        We1[:48], We1[48:96],        # EdgeBlock Lin1 split (src / dest)
        We2,
        Wn1a[:48], Wn1a[48:176],     # node_mlp_1 Lin1 split (x[row] / edge_attr)
        Wn1b,
        Wn2a[:48], Wn2a[48:176],     # node_mlp_2 Lin1 split (x / agg)
        Wn2b,
        Wg1,
        Wg2p,
    ], axis=0)                        # [1088, 128]
    assert wpack.shape[0] == _W_ROWS

    vpack = jnp.concatenate([
        be1, ge1, bbe1, be2,
        bn1a, gn1, bbn1, bn1b,
        bn2a, gn2, bbn2, bn2b,
        bg1, gg, bbg, bg2p,
    ], axis=0)                        # [16, 128]

    bn0 = jnp.concatenate([g0, b0], axis=0)   # [2, 48]
    return wpack, vpack, bn0


def interaction_network(x, edge_index, batch, params, num_graphs):
    """Wrapper: builds bf16 one-hot matrices + reciprocal counts (glue) and calls the kernel."""
    N = x.shape[0]
    row, col = edge_index[0], edge_index[1]

    # one-hot matrices in bf16 (0/1 exact): half the HBM->VMEM bytes of the big [E,N] tensors
    srow = jax.nn.one_hot(row, N, dtype=jnp.bfloat16)            # [E, N]
    scol = jax.nn.one_hot(col, N, dtype=jnp.bfloat16)            # [E, N]  (gather AND scatter)
    sbat = jax.nn.one_hot(batch, num_graphs, dtype=jnp.bfloat16)  # [N, B]

    # reciprocal counts precomputed in f32 (scatter_mean becomes matmul * recip)
    col_cnt = jnp.zeros((N,), jnp.float32).at[col].add(1.0)
    inv_col = (1.0 / jnp.maximum(col_cnt, 1.0))[:, None]          # [N, 1]
    bat_cnt = jnp.zeros((num_graphs,), jnp.float32).at[batch].add(1.0)
    inv_bat = (1.0 / jnp.maximum(bat_cnt, 1.0))[:, None]          # [B, 1]

    wpack, vpack, bn0 = _pack_params(params)

    inputs = [x.astype(jnp.float32), srow, scol, sbat, inv_col, inv_bat,
              bn0, wpack, vpack]
    vmem_spec = pl.BlockSpec(memory_space=pltpu.MemorySpace.VMEM)

    u_pad = pl.pallas_call(
        interaction_network_kernel,
        out_shape=jax.ShapeDtypeStruct((num_graphs, 128), jnp.float32),
        in_specs=[vmem_spec] * len(inputs),
        out_specs=vmem_spec,
        compiler_params=pltpu.CompilerParams(vmem_limit_bytes=32 * 1024 * 1024),
    )(*inputs)
    return u_pad[:, :6]


# ---------------- parameter init (deterministic, PyTorch-style shapes) ----------------
def init_params(key):
    def lin(k, fan_in, fan_out):
        k1, k2 = jax.random.split(k)
        bound = 1.0 / np.sqrt(fan_in)
        W = jax.random.uniform(k1, (fan_in, fan_out), jnp.float32, -bound, bound)
        b = jax.random.uniform(k2, (1, fan_out), jnp.float32, -bound, bound)
        return W, b

    keys = jax.random.split(key, 8)
    ones = lambda n: jnp.ones((1, n), jnp.float32)
    zeros = lambda n: jnp.zeros((1, n), jnp.float32)

    g0, b0 = ones(48), zeros(48)                      # BatchNorm1d(48)
    We1, be1 = lin(keys[0], 96, 128)                  # EdgeBlock Lin(96,128)
    ge1, bbe1 = ones(128), zeros(128)
    We2, be2 = lin(keys[1], 128, 128)                 # EdgeBlock Lin(128,128)
    Wn1a, bn1a = lin(keys[2], 176, 128)               # node_mlp_1 Lin(176,128)
    gn1, bbn1 = ones(128), zeros(128)
    Wn1b, bn1b = lin(keys[3], 128, 128)
    Wn2a, bn2a = lin(keys[4], 176, 128)               # node_mlp_2 Lin(176,128)
    gn2, bbn2 = ones(128), zeros(128)
    Wn2b, bn2b = lin(keys[5], 128, 128)
    Wg1, bg1 = lin(keys[6], 128, 128)                 # GlobalBlock Lin(128,128)
    gg, bbg = ones(128), zeros(128)
    Wg2, bg2 = lin(keys[7], 128, 6)                   # GlobalBlock Lin(128,6)

    return [g0, b0,
            We1, be1, ge1, bbe1, We2, be2,
            Wn1a, bn1a, gn1, bbn1, Wn1b, bn1b,
            Wn2a, bn2a, gn2, bbn2, Wn2b, bn2b,
            Wg1, bg1, gg, bbg, Wg2, bg2]


# ---------------- pure-JAX reference (independent scatter/gather path) ----------------
def reference(x, edge_index, batch, params, num_graphs):
    (g0, b0,
     We1, be1, ge1, bbe1, We2, be2,
     Wn1a, bn1a, gn1, bbn1, Wn1b, bn1b,
     Wn2a, bn2a, gn2, bbn2, Wn2b, bn2b,
     Wg1, bg1, gg, bbg, Wg2, bg2) = params
    N = x.shape[0]

    def bn_train(h, g, bt):
        mu = h.mean(0, keepdims=True)
        var = jnp.square(h - mu).mean(0, keepdims=True)
        return (h - mu) / jnp.sqrt(var + _EPS) * g + bt

    def mlp(h, W1, b1, g, bt, W2, b2):
        h = h @ W1 + b1
        h = jnp.maximum(bn_train(h, g, bt), 0.0)
        return h @ W2 + b2

    xb = bn_train(x, g0, b0)
    row, col = edge_index[0], edge_index[1]
    xs, xd = xb[row], xb[col]
    e = mlp(jnp.concatenate([xs, xd], 1), We1, be1, ge1, bbe1, We2, be2)
    h = mlp(jnp.concatenate([xs, e], 1), Wn1a, bn1a, gn1, bbn1, Wn1b, bn1b)
    agg = jnp.zeros((N, 128), jnp.float32).at[col].add(h)
    cnt = jnp.maximum(jnp.zeros((N,), jnp.float32).at[col].add(1.0), 1.0)
    agg = agg / cnt[:, None]
    xnode = mlp(jnp.concatenate([xb, agg], 1), Wn2a, bn2a, gn2, bbn2, Wn2b, bn2b)
    gsum = jnp.zeros((num_graphs, 128), jnp.float32).at[batch].add(xnode)
    gcnt = jnp.maximum(jnp.zeros((num_graphs,), jnp.float32).at[batch].add(1.0), 1.0)
    gmean = gsum / gcnt[:, None]
    return mlp(gmean, Wg1, bg1, gg, bbg, Wg2, bg2)


if __name__ == "__main__":
    N, E, B, F = 16, 32, 2, 48   # 16 nodes (8 per graph), 32 edges, 2 graphs, 48 features

    key = jax.random.PRNGKey(0)
    kx, ke1, ke2, kp = jax.random.split(key, 4)

    x = jax.random.normal(kx, (N, F), jnp.float32)
    # edges stay within their graph (nodes 0-7 -> graph 0, 8-15 -> graph 1)
    row0 = jax.random.randint(ke1, (E // 2,), 0, N // 2)
    col0 = jax.random.randint(ke2, (E // 2,), 0, N // 2)
    edge_index = jnp.stack([
        jnp.concatenate([row0, row0 + N // 2]),
        jnp.concatenate([col0, col0 + N // 2]),
    ]).astype(jnp.int32)                                   # [2, E]
    batch = jnp.concatenate([jnp.zeros(N // 2, jnp.int32),
                             jnp.ones(N // 2, jnp.int32)])  # [N]

    params = init_params(kp)

    u = interaction_network(x, edge_index, batch, params, B)
    u = jax.block_until_ready(u)

    u_ref = reference(x, edge_index, batch, params, B)
    np.testing.assert_allclose(np.asarray(u), np.asarray(u_ref), rtol=1e-3, atol=1e-3)
    assert u.shape == (B, 6) and bool(jnp.all(jnp.isfinite(u)))

    print("KERNEL_OK")
</pallas_src>

<mosaic_0001>
module attributes {stable_mosaic.version = 11 : i64} {
  func.func @interaction_network_kernel(%arg0: memref<16x48xf32, #tpu.memory_space<vmem>>, %arg1: memref<32x16xbf16, #tpu.memory_space<vmem>>, %arg2: memref<32x16xbf16, #tpu.memory_space<vmem>>, %arg3: memref<16x2xbf16, #tpu.memory_space<vmem>>, %arg4: memref<16x1xf32, #tpu.memory_space<vmem>>, %arg5: memref<2x1xf32, #tpu.memory_space<vmem>>, %arg6: memref<2x48xf32, #tpu.memory_space<vmem>>, %arg7: memref<1088x128xf32, #tpu.memory_space<vmem>>, %arg8: memref<16x128xf32, #tpu.memory_space<vmem>>, %arg9: memref<2x128xf32, #tpu.memory_space<vmem>>) attributes {dimension_semantics = [], scalar_prefetch = 0 : i64, scratch_operands = 0 : i64, tpu.core_type = #tpu.core_type<tc>} {
    %c0 = arith.constant 0 : index
    %c0_0 = arith.constant 0 : index
    %0 = vector.load %arg8[%c0, %c0_0] : memref<16x128xf32, #tpu.memory_space<vmem>>, vector<16x128xf32>
    %c0_1 = arith.constant 0 : index
    %c0_2 = arith.constant 0 : index
    %1 = vector.load %arg0[%c0_1, %c0_2] : memref<16x48xf32, #tpu.memory_space<vmem>>, vector<16x48xf32>
    %c0_3 = arith.constant 0 : index
    %c0_4 = arith.constant 0 : index
    %2 = vector.load %arg6[%c0_3, %c0_4] : memref<2x48xf32, #tpu.memory_space<vmem>>, vector<2x48xf32>
    %cst = arith.constant dense<0.000000e+00> : vector<48xf32>
    %3 = vector.multi_reduction <add>, %1, %cst [0] : vector<16x48xf32> to vector<48xf32>
    %4 = vector.shape_cast %3 : vector<48xf32> to vector<1x48xf32>
    %cst_5 = arith.constant 1.600000e+01 : f32
    %5 = vector.broadcast %cst_5 : f32 to vector<1x48xf32>
    %6 = arith.divf %4, %5 : vector<1x48xf32>
    %7 = arith.mulf %1, %1 : vector<16x48xf32>
    %cst_6 = arith.constant dense<0.000000e+00> : vector<48xf32>
    %8 = vector.multi_reduction <add>, %7, %cst_6 [0] : vector<16x48xf32> to vector<48xf32>
    %9 = vector.shape_cast %8 : vector<48xf32> to vector<1x48xf32>
    %cst_7 = arith.constant 1.600000e+01 : f32
    %10 = vector.broadcast %cst_7 : f32 to vector<1x48xf32>
    %11 = arith.divf %9, %10 : vector<1x48xf32>
    %12 = vector.extract_strided_slice %2 {offsets = [0, 0], sizes = [1, 48], strides = [1, 1]} : vector<2x48xf32> to vector<1x48xf32>
    %13 = arith.mulf %6, %6 : vector<1x48xf32>
    %14 = arith.subf %11, %13 : vector<1x48xf32>
    %cst_8 = arith.constant 9.99999974E-6 : f32
    %15 = vector.broadcast %cst_8 : f32 to vector<1x48xf32>
    %16 = arith.addf %14, %15 : vector<1x48xf32>
    %17 = math.rsqrt %16 : vector<1x48xf32>
    %18 = arith.mulf %12, %17 : vector<1x48xf32>
    %19 = vector.broadcast %18 : vector<1x48xf32> to vector<16x48xf32>
    %20 = arith.mulf %1, %19 : vector<16x48xf32>
    %21 = vector.extract_strided_slice %2 {offsets = [1, 0], sizes = [1, 48], strides = [1, 1]} : vector<2x48xf32> to vector<1x48xf32>
    %22 = arith.mulf %6, %18 : vector<1x48xf32>
    %23 = arith.subf %21, %22 : vector<1x48xf32>
    %24 = vector.broadcast %23 : vector<1x48xf32> to vector<16x48xf32>
    %25 = arith.addf %20, %24 : vector<16x48xf32>
    %c0_9 = arith.constant 0 : index
    %c0_10 = arith.constant 0 : index
    %26 = vector.load %arg1[%c0_9, %c0_10] : memref<32x16xbf16, #tpu.memory_space<vmem>>, vector<32x16xbf16>
    %27 = arith.extf %26 : vector<32x16xbf16> to vector<32x16xf32>
    %c0_11 = arith.constant 0 : index
    %c0_12 = arith.constant 0 : index
    %28 = vector.load %arg2[%c0_11, %c0_12] : memref<32x16xbf16, #tpu.memory_space<vmem>>, vector<32x16xbf16>
    %29 = arith.extf %28 : vector<32x16xbf16> to vector<32x16xf32>
    %cst_13 = arith.constant dense<0.000000e+00> : vector<32x48xf32>
    %30 = tpu.matmul %27, %25, %cst_13 {dimension_numbers = #tpu.dot_dimension_numbers<[1], [0], [0], [1], [0, 0, 1, 1], [], []>} : vector<32x16xf32>, vector<16x48xf32>, vector<32x48xf32> -> vector<32x48xf32>
    %cst_14 = arith.constant dense<0.000000e+00> : vector<32x48xf32>
    %31 = tpu.matmul %29, %25, %cst_14 {dimension_numbers = #tpu.dot_dimension_numbers<[1], [0], [0], [1], [0, 0, 1, 1], [], []>} : vector<32x16xf32>, vector<16x48xf32>, vector<32x48xf32> -> vector<32x48xf32>
    %c0_15 = arith.constant 0 : index
    %c0_16 = arith.constant 0 : index
    %32 = vector.load %arg7[%c0_15, %c0_16] : memref<1088x128xf32, #tpu.memory_space<vmem>>, vector<48x128xf32>
    %cst_17 = arith.constant dense<0.000000e+00> : vector<32x128xf32>
    %33 = tpu.matmul %30, %32, %cst_17 {dimension_numbers = #tpu.dot_dimension_numbers<[1], [0], [0], [1], [0, 0, 1, 1], [], []>} : vector<32x48xf32>, vector<48x128xf32>, vector<32x128xf32> -> vector<32x128xf32>
    %c48 = arith.constant 48 : index
    %c0_18 = arith.constant 0 : index
    %34 = vector.load %arg7[%c48, %c0_18] : memref<1088x128xf32, #tpu.memory_space<vmem>>, vector<48x128xf32>
    %cst_19 = arith.constant dense<0.000000e+00> : vector<32x128xf32>
    %35 = tpu.matmul %31, %34, %cst_19 {dimension_numbers = #tpu.dot_dimension_numbers<[1], [0], [0], [1], [0, 0, 1, 1], [], []>} : vector<32x48xf32>, vector<48x128xf32>, vector<32x128xf32> -> vector<32x128xf32>
    %36 = arith.addf %33, %35 : vector<32x128xf32>
    %37 = vector.extract_strided_slice %0 {offsets = [0, 0], sizes = [1, 128], strides = [1, 1]} : vector<16x128xf32> to vector<1x128xf32>
    %38 = vector.broadcast %37 : vector<1x128xf32> to vector<32x128xf32>
    %39 = arith.addf %36, %38 : vector<32x128xf32>
    %40 = vector.extract_strided_slice %0 {offsets = [1, 0], sizes = [1, 128], strides = [1, 1]} : vector<16x128xf32> to vector<1x128xf32>
    %41 = vector.extract_strided_slice %0 {offsets = [2, 0], sizes = [1, 128], strides = [1, 1]} : vector<16x128xf32> to vector<1x128xf32>
    %cst_20 = arith.constant dense<0.000000e+00> : vector<128xf32>
    %42 = vector.multi_reduction <add>, %39, %cst_20 [0] : vector<32x128xf32> to vector<128xf32>
    %43 = vector.shape_cast %42 : vector<128xf32> to vector<1x128xf32>
    %cst_21 = arith.constant 3.200000e+01 : f32
    %44 = vector.broadcast %cst_21 : f32 to vector<1x128xf32>
    %45 = arith.divf %43, %44 : vector<1x128xf32>
    %46 = arith.mulf %39, %39 : vector<32x128xf32>
    %cst_22 = arith.constant dense<0.000000e+00> : vector<128xf32>
    %47 = vector.multi_reduction <add>, %46, %cst_22 [0] : vector<32x128xf32> to vector<128xf32>
    %48 = vector.shape_cast %47 : vector<128xf32> to vector<1x128xf32>
    %cst_23 = arith.constant 3.200000e+01 : f32
    %49 = vector.broadcast %cst_23 : f32 to vector<1x128xf32>
    %50 = arith.divf %48, %49 : vector<1x128xf32>
    %51 = arith.mulf %45, %45 : vector<1x128xf32>
    %52 = arith.subf %50, %51 : vector<1x128xf32>
    %cst_24 = arith.constant 9.99999974E-6 : f32
    %53 = vector.broadcast %cst_24 : f32 to vector<1x128xf32>
    %54 = arith.addf %52, %53 : vector<1x128xf32>
    %55 = math.rsqrt %54 : vector<1x128xf32>
    %56 = arith.mulf %40, %55 : vector<1x128xf32>
    %57 = arith.mulf %45, %56 : vector<1x128xf32>
    %58 = arith.subf %41, %57 : vector<1x128xf32>
    %59 = vector.broadcast %56 : vector<1x128xf32> to vector<32x128xf32>
    %60 = arith.mulf %39, %59 : vector<32x128xf32>
    %61 = vector.broadcast %58 : vector<1x128xf32> to vector<32x128xf32>
    %62 = arith.addf %60, %61 : vector<32x128xf32>
    %cst_25 = arith.constant 0.000000e+00 : f32
    %63 = vector.broadcast %cst_25 : f32 to vector<32x128xf32>
    %64 = arith.maximumf %62, %63 : vector<32x128xf32>
    %c96 = arith.constant 96 : index
    %c0_26 = arith.constant 0 : index
    %65 = vector.load %arg7[%c96, %c0_26] : memref<1088x128xf32, #tpu.memory_space<vmem>>, vector<128x128xf32>
    %cst_27 = arith.constant dense<0.000000e+00> : vector<32x128xf32>
    %66 = tpu.matmul %64, %65, %cst_27 {dimension_numbers = #tpu.dot_dimension_numbers<[1], [0], [0], [1], [0, 0, 1, 1], [], []>} : vector<32x128xf32>, vector<128x128xf32>, vector<32x128xf32> -> vector<32x128xf32>
    %67 = vector.extract_strided_slice %0 {offsets = [3, 0], sizes = [1, 128], strides = [1, 1]} : vector<16x128xf32> to vector<1x128xf32>
    %68 = vector.broadcast %67 : vector<1x128xf32> to vector<32x128xf32>
    %69 = arith.addf %66, %68 : vector<32x128xf32>
    %c224 = arith.constant 224 : index
    %c0_28 = arith.constant 0 : index
    %70 = vector.load %arg7[%c224, %c0_28] : memref<1088x128xf32, #tpu.memory_space<vmem>>, vector<48x128xf32>
    %cst_29 = arith.constant dense<0.000000e+00> : vector<32x128xf32>
    %71 = tpu.matmul %30, %70, %cst_29 {dimension_numbers = #tpu.dot_dimension_numbers<[1], [0], [0], [1], [0, 0, 1, 1], [], []>} : vector<32x48xf32>, vector<48x128xf32>, vector<32x128xf32> -> vector<32x128xf32>
    %c272 = arith.constant 272 : index
    %c0_30 = arith.constant 0 : index
    %72 = vector.load %arg7[%c272, %c0_30] : memref<1088x128xf32, #tpu.memory_space<vmem>>, vector<128x128xf32>
    %cst_31 = arith.constant dense<0.000000e+00> : vector<32x128xf32>
    %73 = tpu.matmul %69, %72, %cst_31 {dimension_numbers = #tpu.dot_dimension_numbers<[1], [0], [0], [1], [0, 0, 1, 1], [], []>} : vector<32x128xf32>, vector<128x128xf32>, vector<32x128xf32> -> vector<32x128xf32>
    %74 = arith.addf %71, %73 : vector<32x128xf32>
    %75 = vector.extract_strided_slice %0 {offsets = [4, 0], sizes = [1, 128], strides = [1, 1]} : vector<16x128xf32> to vector<1x128xf32>
    %76 = vector.broadcast %75 : vector<1x128xf32> to vector<32x128xf32>
    %77 = arith.addf %74, %76 : vector<32x128xf32>
    %78 = vector.extract_strided_slice %0 {offsets = [5, 0], sizes = [1, 128], strides = [1, 1]} : vector<16x128xf32> to vector<1x128xf32>
    %79 = vector.extract_strided_slice %0 {offsets = [6, 0], sizes = [1, 128], strides = [1, 1]} : vector<16x128xf32> to vector<1x128xf32>
    %cst_32 = arith.constant dense<0.000000e+00> : vector<128xf32>
    %80 = vector.multi_reduction <add>, %77, %cst_32 [0] : vector<32x128xf32> to vector<128xf32>
    %81 = vector.shape_cast %80 : vector<128xf32> to vector<1x128xf32>
    %cst_33 = arith.constant 3.200000e+01 : f32
    %82 = vector.broadcast %cst_33 : f32 to vector<1x128xf32>
    %83 = arith.divf %81, %82 : vector<1x128xf32>
    %84 = arith.mulf %77, %77 : vector<32x128xf32>
    %cst_34 = arith.constant dense<0.000000e+00> : vector<128xf32>
    %85 = vector.multi_reduction <add>, %84, %cst_34 [0] : vector<32x128xf32> to vector<128xf32>
    %86 = vector.shape_cast %85 : vector<128xf32> to vector<1x128xf32>
    %cst_35 = arith.constant 3.200000e+01 : f32
    %87 = vector.broadcast %cst_35 : f32 to vector<1x128xf32>
    %88 = arith.divf %86, %87 : vector<1x128xf32>
    %89 = arith.mulf %83, %83 : vector<1x128xf32>
    %90 = arith.subf %88, %89 : vector<1x128xf32>
    %cst_36 = arith.constant 9.99999974E-6 : f32
    %91 = vector.broadcast %cst_36 : f32 to vector<1x128xf32>
    %92 = arith.addf %90, %91 : vector<1x128xf32>
    %93 = math.rsqrt %92 : vector<1x128xf32>
    %94 = arith.mulf %78, %93 : vector<1x128xf32>
    %95 = arith.mulf %83, %94 : vector<1x128xf32>
    %96 = arith.subf %79, %95 : vector<1x128xf32>
    %97 = vector.broadcast %94 : vector<1x128xf32> to vector<32x128xf32>
    %98 = arith.mulf %77, %97 : vector<32x128xf32>
    %99 = vector.broadcast %96 : vector<1x128xf32> to vector<32x128xf32>
    %100 = arith.addf %98, %99 : vector<32x128xf32>
    %cst_37 = arith.constant 0.000000e+00 : f32
    %101 = vector.broadcast %cst_37 : f32 to vector<32x128xf32>
    %102 = arith.maximumf %100, %101 : vector<32x128xf32>
    %c400 = arith.constant 400 : index
    %c0_38 = arith.constant 0 : index
    %103 = vector.load %arg7[%c400, %c0_38] : memref<1088x128xf32, #tpu.memory_space<vmem>>, vector<128x128xf32>
    %cst_39 = arith.constant dense<0.000000e+00> : vector<32x128xf32>
    %104 = tpu.matmul %102, %103, %cst_39 {dimension_numbers = #tpu.dot_dimension_numbers<[1], [0], [0], [1], [0, 0, 1, 1], [], []>} : vector<32x128xf32>, vector<128x128xf32>, vector<32x128xf32> -> vector<32x128xf32>
    %105 = vector.extract_strided_slice %0 {offsets = [7, 0], sizes = [1, 128], strides = [1, 1]} : vector<16x128xf32> to vector<1x128xf32>
    %106 = vector.broadcast %105 : vector<1x128xf32> to vector<32x128xf32>
    %107 = arith.addf %104, %106 : vector<32x128xf32>
    %cst_40 = arith.constant dense<0.000000e+00> : vector<16x128xf32>
    %108 = tpu.matmul %29, %107, %cst_40 {dimension_numbers = #tpu.dot_dimension_numbers<[0], [0], [1], [1], [0, 1, 1, 1], [], []>} : vector<32x16xf32>, vector<32x128xf32>, vector<16x128xf32> -> vector<16x128xf32>
    %c0_41 = arith.constant 0 : index
    %c0_42 = arith.constant 0 : index
    %109 = vector.load %arg4[%c0_41, %c0_42] : memref<16x1xf32, #tpu.memory_space<vmem>>, vector<16x1xf32>
    %110 = vector.broadcast %109 : vector<16x1xf32> to vector<16x128xf32>
    %111 = arith.mulf %108, %110 : vector<16x128xf32>
    %c528 = arith.constant 528 : index
    %c0_43 = arith.constant 0 : index
    %112 = vector.load %arg7[%c528, %c0_43] : memref<1088x128xf32, #tpu.memory_space<vmem>>, vector<48x128xf32>
    %cst_44 = arith.constant dense<0.000000e+00> : vector<16x128xf32>
    %113 = tpu.matmul %25, %112, %cst_44 {dimension_numbers = #tpu.dot_dimension_numbers<[1], [0], [0], [1], [0, 0, 1, 1], [], []>} : vector<16x48xf32>, vector<48x128xf32>, vector<16x128xf32> -> vector<16x128xf32>
    %c576 = arith.constant 576 : index
    %c0_45 = arith.constant 0 : index
    %114 = vector.load %arg7[%c576, %c0_45] : memref<1088x128xf32, #tpu.memory_space<vmem>>, vector<128x128xf32>
    %cst_46 = arith.constant dense<0.000000e+00> : vector<16x128xf32>
    %115 = tpu.matmul %111, %114, %cst_46 {dimension_numbers = #tpu.dot_dimension_numbers<[1], [0], [0], [1], [0, 0, 1, 1], [], []>} : vector<16x128xf32>, vector<128x128xf32>, vector<16x128xf32> -> vector<16x128xf32>
    %116 = arith.addf %113, %115 : vector<16x128xf32>
    %117 = vector.extract_strided_slice %0 {offsets = [8, 0], sizes = [1, 128], strides = [1, 1]} : vector<16x128xf32> to vector<1x128xf32>
    %118 = vector.broadcast %117 : vector<1x128xf32> to vector<16x128xf32>
    %119 = arith.addf %116, %118 : vector<16x128xf32>
    %120 = vector.extract_strided_slice %0 {offsets = [9, 0], sizes = [1, 128], strides = [1, 1]} : vector<16x128xf32> to vector<1x128xf32>
    %121 = vector.extract_strided_slice %0 {offsets = [10, 0], sizes = [1, 128], strides = [1, 1]} : vector<16x128xf32> to vector<1x128xf32>
    %cst_47 = arith.constant dense<0.000000e+00> : vector<128xf32>
    %122 = vector.multi_reduction <add>, %119, %cst_47 [0] : vector<16x128xf32> to vector<128xf32>
    %123 = vector.shape_cast %122 : vector<128xf32> to vector<1x128xf32>
    %cst_48 = arith.constant 1.600000e+01 : f32
    %124 = vector.broadcast %cst_48 : f32 to vector<1x128xf32>
    %125 = arith.divf %123, %124 : vector<1x128xf32>
    %126 = arith.mulf %119, %119 : vector<16x128xf32>
    %cst_49 = arith.constant dense<0.000000e+00> : vector<128xf32>
    %127 = vector.multi_reduction <add>, %126, %cst_49 [0] : vector<16x128xf32> to vector<128xf32>
    %128 = vector.shape_cast %127 : vector<128xf32> to vector<1x128xf32>
    %cst_50 = arith.constant 1.600000e+01 : f32
    %129 = vector.broadcast %cst_50 : f32 to vector<1x128xf32>
    %130 = arith.divf %128, %129 : vector<1x128xf32>
    %131 = arith.mulf %125, %125 : vector<1x128xf32>
    %132 = arith.subf %130, %131 : vector<1x128xf32>
    %cst_51 = arith.constant 9.99999974E-6 : f32
    %133 = vector.broadcast %cst_51 : f32 to vector<1x128xf32>
    %134 = arith.addf %132, %133 : vector<1x128xf32>
    %135 = math.rsqrt %134 : vector<1x128xf32>
    %136 = arith.mulf %120, %135 : vector<1x128xf32>
    %137 = arith.mulf %125, %136 : vector<1x128xf32>
    %138 = arith.subf %121, %137 : vector<1x128xf32>
    %139 = vector.broadcast %136 : vector<1x128xf32> to vector<16x128xf32>
    %140 = arith.mulf %119, %139 : vector<16x128xf32>
    %141 = vector.broadcast %138 : vector<1x128xf32> to vector<16x128xf32>
    %142 = arith.addf %140, %141 : vector<16x128xf32>
    %cst_52 = arith.constant 0.000000e+00 : f32
    %143 = vector.broadcast %cst_52 : f32 to vector<16x128xf32>
    %144 = arith.maximumf %142, %143 : vector<16x128xf32>
    %c704 = arith.constant 704 : index
    %c0_53 = arith.constant 0 : index
    %145 = vector.load %arg7[%c704, %c0_53] : memref<1088x128xf32, #tpu.memory_space<vmem>>, vector<128x128xf32>
    %cst_54 = arith.constant dense<0.000000e+00> : vector<16x128xf32>
    %146 = tpu.matmul %144, %145, %cst_54 {dimension_numbers = #tpu.dot_dimension_numbers<[1], [0], [0], [1], [0, 0, 1, 1], [], []>} : vector<16x128xf32>, vector<128x128xf32>, vector<16x128xf32> -> vector<16x128xf32>
    %147 = vector.extract_strided_slice %0 {offsets = [11, 0], sizes = [1, 128], strides = [1, 1]} : vector<16x128xf32> to vector<1x128xf32>
    %148 = vector.broadcast %147 : vector<1x128xf32> to vector<16x128xf32>
    %149 = arith.addf %146, %148 : vector<16x128xf32>
    %c0_55 = arith.constant 0 : index
    %c0_56 = arith.constant 0 : index
    %150 = vector.load %arg3[%c0_55, %c0_56] : memref<16x2xbf16, #tpu.memory_space<vmem>>, vector<16x2xbf16>
    %151 = arith.extf %150 : vector<16x2xbf16> to vector<16x2xf32>
    %cst_57 = arith.constant dense<0.000000e+00> : vector<2x128xf32>
    %152 = tpu.matmul %151, %149, %cst_57 {dimension_numbers = #tpu.dot_dimension_numbers<[0], [0], [1], [1], [0, 1, 1, 1], [], []>} : vector<16x2xf32>, vector<16x128xf32>, vector<2x128xf32> -> vector<2x128xf32>
    %c0_58 = arith.constant 0 : index
    %c0_59 = arith.constant 0 : index
    %153 = vector.load %arg5[%c0_58, %c0_59] : memref<2x1xf32, #tpu.memory_space<vmem>>, vector<2x1xf32>
    %154 = vector.broadcast %153 : vector<2x1xf32> to vector<2x128xf32>
    %155 = arith.mulf %152, %154 : vector<2x128xf32>
    %c832 = arith.constant 832 : index
    %c0_60 = arith.constant 0 : index
    %156 = vector.load %arg7[%c832, %c0_60] : memref<1088x128xf32, #tpu.memory_space<vmem>>, vector<128x128xf32>
    %cst_61 = arith.constant dense<0.000000e+00> : vector<2x128xf32>
    %157 = tpu.matmul %155, %156, %cst_61 {dimension_numbers = #tpu.dot_dimension_numbers<[1], [0], [0], [1], [0, 0, 1, 1], [], []>} : vector<2x128xf32>, vector<128x128xf32>, vector<2x128xf32> -> vector<2x128xf32>
    %158 = vector.extract_strided_slice %0 {offsets = [12, 0], sizes = [1, 128], strides = [1, 1]} : vector<16x128xf32> to vector<1x128xf32>
    %159 = vector.broadcast %158 : vector<1x128xf32> to vector<2x128xf32>
    %160 = arith.addf %157, %159 : vector<2x128xf32>
    %161 = vector.extract_strided_slice %0 {offsets = [13, 0], sizes = [1, 128], strides = [1, 1]} : vector<16x128xf32> to vector<1x128xf32>
    %162 = vector.extract_strided_slice %0 {offsets = [14, 0], sizes = [1, 128], strides = [1, 1]} : vector<16x128xf32> to vector<1x128xf32>
    %cst_62 = arith.constant dense<0.000000e+00> : vector<128xf32>
    %163 = vector.multi_reduction <add>, %160, %cst_62 [0] : vector<2x128xf32> to vector<128xf32>
    %164 = vector.shape_cast %163 : vector<128xf32> to vector<1x128xf32>
    %cst_63 = arith.constant 2.000000e+00 : f32
    %165 = vector.broadcast %cst_63 : f32 to vector<1x128xf32>
    %166 = arith.divf %164, %165 : vector<1x128xf32>
    %167 = arith.mulf %160, %160 : vector<2x128xf32>
    %cst_64 = arith.constant dense<0.000000e+00> : vector<128xf32>
    %168 = vector.multi_reduction <add>, %167, %cst_64 [0] : vector<2x128xf32> to vector<128xf32>
    %169 = vector.shape_cast %168 : vector<128xf32> to vector<1x128xf32>
    %cst_65 = arith.constant 2.000000e+00 : f32
    %170 = vector.broadcast %cst_65 : f32 to vector<1x128xf32>
    %171 = arith.divf %169, %170 : vector<1x128xf32>
    %172 = arith.mulf %166, %166 : vector<1x128xf32>
    %173 = arith.subf %171, %172 : vector<1x128xf32>
    %cst_66 = arith.constant 9.99999974E-6 : f32
    %174 = vector.broadcast %cst_66 : f32 to vector<1x128xf32>
    %175 = arith.addf %173, %174 : vector<1x128xf32>
    %176 = math.rsqrt %175 : vector<1x128xf32>
    %177 = arith.mulf %161, %176 : vector<1x128xf32>
    %178 = arith.mulf %166, %177 : vector<1x128xf32>
    %179 = arith.subf %162, %178 : vector<1x128xf32>
    %180 = vector.broadcast %177 : vector<1x128xf32> to vector<2x128xf32>
    %181 = arith.mulf %160, %180 : vector<2x128xf32>
    %182 = vector.broadcast %179 : vector<1x128xf32> to vector<2x128xf32>
    %183 = arith.addf %181, %182 : vector<2x128xf32>
    %cst_67 = arith.constant 0.000000e+00 : f32
    %184 = vector.broadcast %cst_67 : f32 to vector<2x128xf32>
    %185 = arith.maximumf %183, %184 : vector<2x128xf32>
    %c960 = arith.constant 960 : index
    %c0_68 = arith.constant 0 : index
    %186 = vector.load %arg7[%c960, %c0_68] : memref<1088x128xf32, #tpu.memory_space<vmem>>, vector<128x128xf32>
    %cst_69 = arith.constant dense<0.000000e+00> : vector<2x128xf32>
    %187 = tpu.matmul %185, %186, %cst_69 {dimension_numbers = #tpu.dot_dimension_numbers<[1], [0], [0], [1], [0, 0, 1, 1], [], []>} : vector<2x128xf32>, vector<128x128xf32>, vector<2x128xf32> -> vector<2x128xf32>
    %188 = vector.extract_strided_slice %0 {offsets = [15, 0], sizes = [1, 128], strides = [1, 1]} : vector<16x128xf32> to vector<1x128xf32>
    %189 = vector.broadcast %188 : vector<1x128xf32> to vector<2x128xf32>
    %190 = arith.addf %187, %189 : vector<2x128xf32>
    %c0_70 = arith.constant 0 : index
    %c0_71 = arith.constant 0 : index
    %191 = vector.load %arg9[%c0_70, %c0_71] : memref<2x128xf32, #tpu.memory_space<vmem>>, vector<2x128xf32>
    tpu.vector_store %arg9[%c0_70, %c0_71], %190 {strides = array<i32>} : memref<2x128xf32, #tpu.memory_space<vmem>>, vector<2x128xf32>,
    return
  }
}

</mosaic_0001>

<bundles_post_ra>
// kernel: tpu_custom_call.1
= control target key start
LH: loop header
LB: loop body
LE: loop exit
PB: predicated region body
PF: predicated region fallthrough
CT: control target
= control target key end

     0   :  { %14 = vsyncpa [#allocation3], 0  ;;  %s2780_s0 = inlined_call_operand.vmem [shape: f32[16,48], index: 0, kind: input, shape index: {}]   ;;  %s2781_s1 = inlined_call_operand.vmem [shape: bf16[32,16], index: 1, kind: input, shape index: {}]   ;;  %s2782_s2 = inlined_call_operand.vmem [shape: bf16[32,16], index: 2, kind: input, shape index: {}]   ;;  %s2783_s3 = inlined_call_operand.vmem [shape: bf16[16,2], index: 3, kind: input, shape index: {}]   ;;  %s2784_s4 = inlined_call_operand.vmem [shape: f32[16,1], index: 4, kind: input, shape index: {}]   ;;  %s2785_s5 = inlined_call_operand.vmem [shape: f32[2,1], index: 5, kind: input, shape index: {}]   ;;  %s2786_s6 = inlined_call_operand.vmem [shape: f32[2,48], index: 6, kind: input, shape index: {}]   ;;  %s2787_s7 = inlined_call_operand.hbm [shape: f32[1088,128], index: 7, kind: input, shape index: {}]   ;;  %s2788_s8 = inlined_call_operand.vmem [shape: f32[16,128], index: 8, kind: input, shape index: {}]   ;;  %s2789_s9 = inlined_call_operand.hbm [shape: f32[2,128], index: 9, kind: output, shape index: {}]  }
   0x1   :  { %15 = vsyncpa [#allocation4], 0  ;;  %s2503_s30 = smov [#allocation2]  }
   0x2   :  { %s35_s10 = sshll.u32 %s2503_s30, 4  ;;  %s36_s10 = int_to_ptr.vmem [resolvable:$true] %s35_s10 }
   0x3   :  { %s2467_s11 = scalar_lea.vmem %s36_s10, 17408  ;;  %p2472_p1 = scmp.lt.s32.totalorder %s36_s10, %s36_s10 }
   0x4   :  { %p2468_p0 = scmp.ne.s32.totalorder %s36_s10, %s2467_s11  ;;  %p2473_p2 = scmp.lt.s32.totalorder %s2467_s11, %s2467_s11 }
   0x6   :  { %p2474_p3 = por %p2473_p2, %p2472_p1 }
   0x8   :  { %p2475_p4 = pnand %p2474_p3, %p2468_p0 }
   0xa   :  { %2478 = shalt.err (!%p2475_p4)
}
   0xb   :  { %s2504_s12 = smov 128   ;;  %s2505_s13 = smov 8  }
   0xc   :  { %41 = dma.hbm_to_vmem [thread:$0]  %s2787_s7, 17408, %s36_s10, [#allocation3], %s2504_s12, %s2504_s12, %s2505_s13  }
   0xd   :  { %2499 = dma.done.wait [#allocation3], 17408  }
   0xe   :  { %2500 = vsyncadd [#allocation3], 4294949888  ;;  %vm52_vm0 = vcmask 392192   ;;  %v49_v0 = vld [vmem:[%s2780_s0] sm:$0xff]  ;;  %v50_v1 = vld [vmem:[%s2780_s0 + $0x8] sm:$0xff]  ;;  %vm114_vm1 = vcmask 130048   ;;  %v81_v35 = vlaneseq }
   0xf   :  { %v53_v2 = vsel %vm52_vm0, %v49_v0, 0.0  ;;  %v54_v3 = vsel %vm52_vm0, %v50_v1, 0.0  ;;  %v64_v4 = vmul.f32 %v49_v0, %v49_v0  ;;  %v65_v5 = vmul.f32 %v50_v1, %v50_v1  ;;  %v2574_v6 = vld [vmem:[%s2782_s2] sm:$0xff]   ;;  %v1889_v18 = vld [vmem:[%s2782_s2 + $0x8] sm:$0xff]   ;;  %v320_v54 = vld [vmem:[#allocation2 + $0x58] sm:$0xff] }
  0x10   :  { %v2579_v7 = vld [vmem:[%s2781_s1] sm:$0xff]   ;;  %v55_v8 = vadd.f32 %v54_v3, %v53_v2  ;;  %v1878_v9 = vunpack.c.l.bf16 %v2574_v6  ;;  %v1879_v17 = vunpack.c.h.bf16 %v2574_v6  ;;  %v1882_v23 = vunpack.c.l.bf16 %v1889_v18  ;;  %v1888_v51 = vld [vmem:[%s2781_s1 + $0x8] sm:$0xff]   ;;  %v319_v56 = vld [vmem:[#allocation2 + $0x50] sm:$0xff] }
  0x11   :  { %v66_v10 = vsel %vm52_vm0, %v64_v4, 0.0  ;;  %v67_v11 = vsel %vm52_vm0, %v65_v5, 0.0  ;;  %v1870_v12 = vunpack.c.l.bf16 %v2579_v7  ;;  %v1883_v28 = vunpack.c.h.bf16 %v1889_v18  ;;  %v51_v37 = vld [vmem:[%s2786_s6] sm:$0x3]  ;;  %v318_v57 = vld [vmem:[#allocation2 + $0x48] sm:$0xff]  ;;  %v316_v59 = vld [vmem:[#allocation2 + $0x38] sm:$0xff] }
  0x12   :  { %v56_v13 = vrot.slane %v55_v8, 4  ;;  %v68_v14 = vadd.f32 %v67_v11, %v66_v10  ;;  %2093 = vmatprep.mubr.msk.f32.mxu1 %vm114_vm1, %v1878_v9  ;;  %1042 = vxpose.xlu0.b32.start [1/4] (short) (narrow) %v1878_v9, 16  ;;  %v2591_v36 = vshrl.u32 %v81_v35, 7  ;;  %v1871_v52 = vunpack.c.h.bf16 %v2579_v7  ;;  %v317_v58 = vld [vmem:[#allocation2 + $0x40] sm:$0xff]  ;;  %v315_v60 = vld [vmem:[#allocation2 + $0x30] sm:$0xff]  ;;  %v314_v61 = vld [vmem:[#allocation2 + $0x28] sm:$0xff] }
  0x13   :  { %2083 = vmatprep.mubr.msk.f32.mxu0 %vm114_vm1, %v1870_v12  ;;  %v1874_v53 = vunpack.c.l.bf16 %v1888_v51  ;;  %v1875_v55 = vunpack.c.h.bf16 %v1888_v51  ;;  %v312_v3 = vld [vmem:[#allocation2 + $0x18] sm:$0xff]  ;;  %v311_v6 = vld [vmem:[#allocation2 + $0x10] sm:$0xff]  ;;  %v310_v7 = vld [vmem:[#allocation2 + $0x8] sm:$0xff]  ;;  %vm1074_vm2 = vcmask 261120   ;;  %vm2508_vm3 = vmmov 0  }
  0x14   :  { %v57_v15 = vadd.f32 %v56_v13, %v55_v8  ;;  %v69_v16 = vrot.slane %v68_v14, 4  ;;  %v2597_v38 = vsub.s32 0, %v2591_v36  ;;  %v2601_v44 = vsub.s32 1, %v2591_v36  ;;  %v309_v9 = vld [vmem:[#allocation2] sm:$0xff]  ;;  %v593_v11 = vld [vmem:[#allocation2 + $0xd8] sm:$0xff]  ;;  %v592_v12 = vld [vmem:[#allocation2 + $0xd0] sm:$0xff] }
  0x15   :  { %v591_v13 = vld [vmem:[#allocation2 + $0xc8] sm:$0xff]  ;;  %v586_v18 = vld [vmem:[#allocation2 + $0xa0] sm:$0xff]  ;;  %v697_v35 = vld [vmem:[#allocation2 + $0x150] sm:$0xff]  ;;  %vm1697_vm4 = vcmask 1041408  }
  0x16   :  { %v58_v19 = vrot.slane %v57_v15, 2  ;;  %v70_v20 = vadd.f32 %v69_v16, %v68_v14  ;;  %1043 = vxpose.xlu0.b32.cont [2/4] (short) (narrow) %v1879_v17, 16  ;;  %v590_v14 = vld [vmem:[#allocation2 + $0xc0] sm:$0xff]  ;;  %v588_v16 = vld [vmem:[#allocation2 + $0xb0] sm:$0xff] }
  0x18   :  { %v59_v21 = vadd.f32 %v58_v19, %v57_v15  ;;  %v71_v22 = vrot.slane %v70_v20, 2  ;;  %v589_v15 = vld [vmem:[#allocation2 + $0xb8] sm:$0xff] }
  0x19   :  { %v585_v19 = vld [vmem:[#allocation2 + $0x98] sm:$0xff] }
  0x1a   :  { %v60_v24 = vrot.slane %v59_v21, 1  ;;  %v72_v25 = vadd.f32 %v71_v22, %v70_v20  ;;  %1044 = vxpose.xlu0.b32.cont [3/4] (short) (narrow) %v1882_v23, 16  ;;  %v584_v20 = vld [vmem:[#allocation2 + $0x90] sm:$0xff]  ;;  %v582_v22 = vld [vmem:[#allocation2 + $0x80] sm:$0xff] }
  0x1c   :  { %v61_v26 = vadd.f32 %v60_v24, %v59_v21  ;;  %v73_v27 = vrot.slane %v72_v25, 1  ;;  %v583_v21 = vld [vmem:[#allocation2 + $0x88] sm:$0xff]  ;;  %v580_v24 = vld [vmem:[#allocation2 + $0x70] sm:$0xff] }
  0x1e   :  { %v63_v29 = vmul.f32 0.0625, %v61_v26  ;;  %v74_v30 = vadd.f32 %v73_v27, %v72_v25  ;;  %1045 = vxpose.xlu0.b32.end [4/4] (short) (narrow) %v1883_v28, 16  ;;  %v579_v25 = vld [vmem:[#allocation2 + $0x68] sm:$0xff]  ;;  %v578_v26 = vld [vmem:[#allocation2 + $0x60] sm:$0xff] }
  0x1f   :  { %v2646_v27 = vld [vmem:[#allocation2 + $0x108] sm:$0xff] }
  0x20   :  { %v75_v31 = vmul.f32 0.0625, %v74_v30  ;;  %v76_v32 = vmul.f32 %v63_v29, %v63_v29  ;;  %v702_v30 = vld [vmem:[#allocation2 + $0x178] sm:$0xff] }
  0x22   :  { %v77_v33 = vsub.f32 %v75_v31, %v76_v32  ;;  %v701_v31 = vld [vmem:[#allocation2 + $0x170] sm:$0xff]  ;;  %v700_v32 = vld [vmem:[#allocation2 + $0x168] sm:$0xff] }
  0x24   :  { %v78_v34 = vadd.f32 1e-05, %v77_v33  ;;  %v699_v33 = vld [vmem:[#allocation2 + $0x160] sm:$0xff] }
  0x26   :  { %2449 = vrsqrt.f32 %v78_v34  ;;  %v698_v34 = vld [vmem:[#allocation2 + $0x158] sm:$0xff] }
  0x33   :  { %v2450_v39 = vpop.eup %2449 }
  0x34   :  { %v80_v40 = vmul.f32 %v2450_v39, %v51_v37  ;;  %v695_v39 = vld [vmem:[#allocation2 + $0x140] sm:$0xff] }
  0x36   :  { %v84_v41 = vrot.slane %v80_v40, %v2597_v38  ;;  %v87_v42 = vmul.f32 %v80_v40, %v63_v29  ;;  %v703_v29 = vld [vmem:[#allocation2 + $0x180] sm:$0xff]  ;;  %v694_v40 = vld [vmem:[#allocation2 + $0x138] sm:$0xff] }
  0x38   :  { %v89_v43 = vrot.slane %v87_v42, 7  ;;  %v86_v45 = vmul.f32 %v84_v41, %v50_v1  ;;  %v85_v47 = vmul.f32 %v84_v41, %v49_v0  ;;  %v313_v1 = vld [vmem:[#allocation2 + $0x20] sm:$0xff]  ;;  %v693_v41 = vld [vmem:[#allocation2 + $0x130] sm:$0xff]  ;;  %v692_v42 = vld [vmem:[#allocation2 + $0x128] sm:$0xff] }
  0x3a   :  { %v91_v46 = vsub.f32 %v51_v37, %v89_v43  ;;  %v696_v37 = vld [vmem:[#allocation2 + $0x148] sm:$0xff] }
  0x3c   :  { %v95_v48 = vrot.slane %v91_v46, %v2601_v44 }
  0x3e   :  { %v2604_v49 = vadd.f32 %v95_v48, %v86_v45  ;;  %v2606_v50 = vadd.f32 %v95_v48, %v85_v47  ;;  %v2652_v48 = vld [vmem:[%s2788_s8] sm:$0xff] }
  0x40   :  { %2089 = vmatprep.subr.mxu1 %v2604_v49  ;;  %2079 = vmatprep.subr.mxu0 %v2604_v49 }
  0x41   :  { %2090 = vmatpush3.msra.mxu1 %v2604_v49  ;;  %2080 = vmatpush3.msra.mxu0 %v2604_v49 }
  0x42   :  { %2091 = vmatprep.subr.mxu1 %v2606_v50  ;;  %2081 = vmatprep.subr.mxu0 %v2606_v50 }
  0x43   :  { %2092 = vmatpush3.msra.mxu1 %v2606_v50  ;;  %2082 = vmatpush3.msra.mxu0 %v2606_v50 }
  0x44   :  { %2094 = vmatmul.mubr.msk.f32.vlgmr.msra.gmra.mxu1 %vm114_vm1, %v1879_v17  ;;  %2084 = vmatmul.mubr.msk.f32.vlgmr.msra.gmra.mxu0 %vm114_vm1, %v1871_v52  ;;  %v587_v17 = vld [vmem:[#allocation2 + $0xa8] sm:$0xff] }
  0x45   :  { %2096 = vmatprep.mubr.msk.f32.mxu1 %vm114_vm1, %v1882_v23  ;;  %2086 = vmatprep.mubr.msk.f32.mxu0 %vm114_vm1, %v1874_v53  ;;  %v581_v23 = vld [vmem:[#allocation2 + $0x78] sm:$0xff]  ;;  %v518_v53 = vrot.slane %v2652_v48, %v2597_v38 }
  0x46   :  { %2099 = vmatprep.subr.mxu0 %v320_v54 }
  0x47   :  { %2100 = vmatpush3.msra.mxu0 %v320_v54 }
  0x48   :  { %2097 = vmatmul.mubr.msk.f32.gmra.mxu1 %vm114_vm1, %v1883_v28  ;;  %2087 = vmatmul.mubr.msk.f32.gmra.mxu0 %vm114_vm1, %v1875_v55  ;;  %v704_v28 = vld [vmem:[#allocation2 + $0x188] sm:$0xff] }
  0x49   :  { %2101 = vmatprep.subr.mxu0 %v319_v56  ;;  %2173 = vmatprep.subr.mxu1 %v704_v28 }
  0x4a   :  { %2102 = vmatpush3.msra.mxu0 %v319_v56  ;;  %2174 = vmatpush3.msra.mxu1 %v704_v28 }
  0x4b   :  { %2103 = vmatprep.subr.mxu0 %v318_v57  ;;  %2175 = vmatprep.subr.mxu1 %v703_v29 }
  0x4c   :  { %2104 = vmatpush3.msra.mxu0 %v318_v57  ;;  %2176 = vmatpush3.msra.mxu1 %v703_v29 }
  0x4d   :  { %2105 = vmatprep.subr.mxu0 %v317_v58  ;;  %2177 = vmatprep.subr.mxu1 %v702_v30 }
  0x4e   :  { %2106 = vmatpush3.msra.mxu0 %v317_v58  ;;  %2178 = vmatpush3.msra.mxu1 %v702_v30 }
  0x4f   :  { %2107 = vmatprep.subr.mxu0 %v316_v59  ;;  %2179 = vmatprep.subr.mxu1 %v701_v31 }
  0x50   :  { %2108 = vmatpush3.msra.mxu0 %v316_v59  ;;  %2180 = vmatpush3.msra.mxu1 %v701_v31 }
  0x51   :  { %2109 = vmatprep.subr.mxu0 %v315_v60  ;;  %2181 = vmatprep.subr.mxu1 %v700_v32 }
  0x52   :  { %2110 = vmatpush3.msra.mxu0 %v315_v60  ;;  %2182 = vmatpush3.msra.mxu1 %v700_v32 }
  0x53   :  { %2117 = vmatprep.subr.mxu0 %v314_v61  ;;  %2183 = vmatprep.subr.mxu1 %v699_v33 }
  0x54   :  { %2184 = vmatpush3.msra.mxu1 %v699_v33 }
  0x55   :  { %2185 = vmatprep.subr.mxu1 %v698_v34 }
  0x56   :  { %2186 = vmatpush3.msra.mxu1 %v698_v34 }
  0x57   :  { %2187 = vmatprep.subr.mxu1 %v697_v35 }
  0x58   :  { %2188 = vmatpush3.msra.mxu1 %v697_v35 }
  0x59   :  { %2189 = vmatprep.subr.mxu1 %v696_v37 }
  0x5a   :  { %2190 = vmatpush3.msra.mxu1 %v696_v37 }
  0x5b   :  { %2191 = vmatprep.subr.mxu1 %v695_v39 }
  0x5c   :  { %2192 = vmatpush3.msra.mxu1 %v695_v39  ;;  %v568_v39 = vsub.s32 2, %v2591_v36 }
  0x5d   :  { %2193 = vmatprep.subr.mxu1 %v694_v40 }
  0x5e   :  { %2194 = vmatpush3.msra.mxu1 %v694_v40 }
  0x5f   :  { %2195 = vmatprep.subr.mxu1 %v693_v41 }
  0x60   :  { %2196 = vmatpush3.msra.mxu1 %v693_v41 }
  0x61   :  { %2197 = vmatprep.subr.mxu1 %v692_v42 }
  0x62   :  { %2198 = vmatpush3.msra.mxu1 %v692_v42 }
 0x104   :  { %v2095_v62 = vpop.f32.mrf.mxu1  ;;  %v2626_v0 = vpop.f32.mrf.mxu0 }
 0x106   :  { %v290_v63 = vpop.f32.mrf.mxu1  ;;  %v2630_v5 = vpop.f32.mrf.mxu0 }
 0x107   :  { %2111 = vmatprep.mubr.msk.f32.mxu0 %vm52_vm0, %v290_v63 }
 0x108   :  { %v2098_v2 = vpop.f32.mrf.mxu1  ;;  %2112 = vmatmul.mubr.msk.f32.vlgmr.msra.gmra.mxu0 %vm52_vm0, %v2095_v62  ;;  %v2636_v8 = vpop.f32.mrf.mxu0 }
 0x109   :  { %2118 = vmatpush3.msra.mxu0 %v314_v61 }
 0x10a   :  { %2119 = vmatprep.subr.mxu0 %v313_v1  ;;  %v300_v4 = vpop.f32.mrf.mxu1  ;;  %v2638_v10 = vpop.f32.mrf.mxu0 }
 0x10b   :  { %2120 = vmatpush3.msra.mxu0 %v313_v1  ;;  %2114 = vmatprep.mubr.msk.f32.mxu0 %vm52_vm0, %v300_v4 }
 0x10c   :  { %2121 = vmatprep.subr.mxu0 %v312_v3  ;;  %2115 = vmatmul.mubr.msk.f32.gmra.mxu0 %vm52_vm0, %v2098_v2 }
 0x10d   :  { %2122 = vmatpush3.msra.mxu0 %v312_v3  ;;  %2129 = vmatprep.mubr.msk.f32.mxu0 %vm52_vm0, %v2630_v5 }
 0x10e   :  { %2123 = vmatprep.subr.mxu0 %v311_v6 }
 0x10f   :  { %2124 = vmatpush3.msra.mxu0 %v311_v6 }
 0x110   :  { %2125 = vmatprep.subr.mxu0 %v310_v7 }
 0x111   :  { %2126 = vmatpush3.msra.mxu0 %v310_v7 }
 0x112   :  { %2127 = vmatprep.subr.mxu0 %v309_v9 }
 0x113   :  { %2128 = vmatpush3.msra.mxu0 %v309_v9 }
 0x114   :  { %2130 = vmatmul.mubr.msk.f32.vlgmr.msra.gmra.mxu0 %vm52_vm0, %v2626_v0  ;;  %2135 = vmatprep.subr.mxu0 %v593_v11 }
 0x115   :  { %2132 = vmatprep.mubr.msk.f32.mxu0 %vm52_vm0, %v2638_v10  ;;  %2136 = vmatpush3.msra.mxu0 %v593_v11 }
 0x116   :  { %2137 = vmatprep.subr.mxu0 %v592_v12 }
 0x117   :  { %2138 = vmatpush3.msra.mxu0 %v592_v12 }
 0x118   :  { %2133 = vmatmul.mubr.msk.f32.gmra.mxu0 %vm52_vm0, %v2636_v8  ;;  %2139 = vmatprep.subr.mxu0 %v591_v13 }
 0x119   :  { %2140 = vmatpush3.msra.mxu0 %v591_v13 }
 0x11a   :  { %2141 = vmatprep.subr.mxu0 %v590_v14 }
 0x11b   :  { %2142 = vmatpush3.msra.mxu0 %v590_v14 }
 0x11c   :  { %2143 = vmatprep.subr.mxu0 %v589_v15 }
 0x11d   :  { %2144 = vmatpush3.msra.mxu0 %v589_v15 }
 0x11e   :  { %2145 = vmatprep.subr.mxu0 %v588_v16 }
 0x11f   :  { %2146 = vmatpush3.msra.mxu0 %v588_v16 }
 0x120   :  { %2147 = vmatprep.subr.mxu0 %v587_v17 }
 0x121   :  { %2148 = vmatpush3.msra.mxu0 %v587_v17 }
 0x122   :  { %2149 = vmatprep.subr.mxu0 %v586_v18 }
 0x123   :  { %2150 = vmatpush3.msra.mxu0 %v586_v18 }
 0x124   :  { %2151 = vmatprep.subr.mxu0 %v585_v19 }
 0x125   :  { %2152 = vmatpush3.msra.mxu0 %v585_v19 }
 0x126   :  { %2153 = vmatprep.subr.mxu0 %v584_v20 }
 0x127   :  { %2154 = vmatpush3.msra.mxu0 %v584_v20 }
 0x128   :  { %2155 = vmatprep.subr.mxu0 %v583_v21 }
 0x129   :  { %2156 = vmatpush3.msra.mxu0 %v583_v21 }
 0x12a   :  { %2157 = vmatprep.subr.mxu0 %v582_v22 }
 0x12b   :  { %2158 = vmatpush3.msra.mxu0 %v582_v22 }
 0x12c   :  { %2159 = vmatprep.subr.mxu0 %v581_v23 }
 0x12d   :  { %2160 = vmatpush3.msra.mxu0 %v581_v23 }
 0x12e   :  { %2161 = vmatprep.subr.mxu0 %v580_v24 }
 0x12f   :  { %2162 = vmatpush3.msra.mxu0 %v580_v24 }
 0x130   :  { %2163 = vmatprep.subr.mxu0 %v579_v25 }
 0x131   :  { %2164 = vmatpush3.msra.mxu0 %v579_v25 }
 0x132   :  { %2165 = vmatprep.subr.mxu0 %v578_v26 }
 0x133   :  { %2166 = vmatpush3.msra.mxu0 %v578_v26 }
 0x134   :  { %2211 = vmatprep.subr.mxu0 %v2646_v27 }
 0x1c8   :  { %v2113_v43 = vpop.f32.mrf.mxu0 }
 0x1ca   :  { %v399_v45 = vpop.f32.mrf.mxu0 }
 0x1cc   :  { %v2116_v46 = vpop.f32.mrf.mxu0 }
 0x1ce   :  { %v409_v47 = vpop.f32.mrf.mxu0 }
 0x1d4   :  { %v2131_v51 = vpop.f32.mrf.mxu0 }
 0x1d5   :  { %v502_v52 = vadd.f32 %v2131_v51, %v2113_v43 }
 0x1d6   :  { %v496_v54 = vpop.f32.mrf.mxu0 }
 0x1d7   :  { %v497_v55 = vadd.f32 %v496_v54, %v399_v45  ;;  %v520_v57 = vadd.f32 %v518_v53, %v502_v52 }
 0x1d8   :  { %v2134_v56 = vpop.f32.mrf.mxu0 }
 0x1d9   :  { %v519_v58 = vadd.f32 %v518_v53, %v497_v55  ;;  %v512_v59 = vadd.f32 %v2134_v56, %v2116_v46  ;;  %v535_v63 = vmul.f32 %v520_v57, %v520_v57 }
 0x1da   :  { %v506_v60 = vpop.f32.mrf.mxu0 }
 0x1db   :  { %v534_v61 = vmul.f32 %v519_v58, %v519_v58  ;;  %v507_v62 = vadd.f32 %v506_v60, %v409_v47  ;;  %v523_v1 = vadd.f32 %v520_v57, %v519_v58  ;;  %v522_v2 = vadd.f32 %v518_v53, %v512_v59  ;;  %v687_v59 = vld [vmem:[#allocation2 + $0x100] sm:$0xff] }
 0x1dd   :  { %v521_v3 = vadd.f32 %v518_v53, %v507_v62  ;;  %v538_v4 = vadd.f32 %v535_v63, %v534_v61  ;;  %v537_v9 = vmul.f32 %v522_v2, %v522_v2  ;;  %v684_v61 = vld [vmem:[#allocation2 + $0xe8] sm:$0xff]  ;;  %v683_v62 = vld [vmem:[#allocation2 + $0xe0] sm:$0xff]  ;;  %v689_v63 = vld [vmem:[#allocation2 + $0x110] sm:$0xff] }
 0x1df   :  { %v524_v6 = vadd.f32 %v523_v1, %v521_v3  ;;  %v536_v7 = vmul.f32 %v521_v3, %v521_v3  ;;  %v596_v1 = vsub.s32 3, %v2591_v36 }
 0x1e1   :  { %v525_v11 = vadd.f32 %v524_v6, %v522_v2  ;;  %v539_v12 = vadd.f32 %v538_v4, %v536_v7 }
 0x1e3   :  { %v526_v13 = vrot.slane %v525_v11, 4  ;;  %v540_v14 = vadd.f32 %v539_v12, %v537_v9  ;;  %v951_v12 = vld [vmem:[#allocation2 + $0x200] sm:$0xff] }
 0x1e5   :  { %v527_v15 = vadd.f32 %v526_v13, %v525_v11  ;;  %v541_v16 = vrot.slane %v540_v14, 4  ;;  %v952_v11 = vld [vmem:[#allocation2 + $0x208] sm:$0xff]  ;;  %v950_v13 = vld [vmem:[#allocation2 + $0x1f8] sm:$0xff] }
 0x1e7   :  { %v528_v17 = vrot.slane %v527_v15, 2  ;;  %v542_v18 = vadd.f32 %v541_v16, %v540_v14  ;;  %v949_v14 = vld [vmem:[#allocation2 + $0x1f0] sm:$0xff]  ;;  %v947_v16 = vld [vmem:[#allocation2 + $0x1e0] sm:$0xff] }
 0x1e9   :  { %v529_v19 = vadd.f32 %v528_v17, %v527_v15  ;;  %v543_v20 = vrot.slane %v542_v18, 2  ;;  %v948_v15 = vld [vmem:[#allocation2 + $0x1e8] sm:$0xff]  ;;  %v946_v17 = vld [vmem:[#allocation2 + $0x1d8] sm:$0xff] }
 0x1eb   :  { %v530_v21 = vrot.slane %v529_v19, 1  ;;  %v544_v22 = vadd.f32 %v543_v20, %v542_v18  ;;  %v945_v18 = vld [vmem:[#allocation2 + $0x1d0] sm:$0xff]  ;;  %v943_v20 = vld [vmem:[#allocation2 + $0x1c0] sm:$0xff] }
 0x1ed   :  { %v531_v23 = vadd.f32 %v530_v21, %v529_v19  ;;  %v545_v24 = vrot.slane %v544_v22, 1  ;;  %v944_v19 = vld [vmem:[#allocation2 + $0x1c8] sm:$0xff]  ;;  %v942_v21 = vld [vmem:[#allocation2 + $0x1b8] sm:$0xff] }
 0x1ef   :  { %v533_v25 = vmul.f32 0.03125, %v531_v23  ;;  %v546_v26 = vadd.f32 %v545_v24, %v544_v22  ;;  %v941_v22 = vld [vmem:[#allocation2 + $0x1b0] sm:$0xff]  ;;  %v940_v23 = vld [vmem:[#allocation2 + $0x1a8] sm:$0xff]  ;;  %v939_v24 = vld [vmem:[#allocation2 + $0x1a0] sm:$0xff] }
 0x1f1   :  { %v547_v28 = vmul.f32 0.03125, %v546_v26  ;;  %v548_v29 = vmul.f32 %v533_v25, %v533_v25  ;;  %v937_v26 = vld [vmem:[#allocation2 + $0x190] sm:$0xff] }
 0x1f3   :  { %v549_v30 = vsub.f32 %v547_v28, %v548_v29  ;;  %v877_v29 = vsub.s32 4, %v2591_v36 }
 0x1f5   :  { %v550_v31 = vadd.f32 1e-05, %v549_v30 }
 0x1f7   :  { %2451 = vrsqrt.f32 %v550_v31 }
 0x204   :  { %v2452_v32 = vpop.eup %2451 }
 0x205   :  { %v552_v33 = vmul.f32 %v2452_v32, %v2652_v48 }
 0x207   :  { %v553_v34 = vmul.f32 %v552_v33, %v533_v25  ;;  %v561_v37 = vrot.slane %v552_v33, %v2601_v44  ;;  %v938_v25 = vld [vmem:[#allocation2 + $0x198] sm:$0xff]  ;;  %v878_v33 = vrot.slane %v2652_v48, %v877_v29 }
 0x209   :  { %v555_v35 = vrot.slane %v553_v34, 7  ;;  %v562_v41 = vmul.f32 %v561_v37, %v519_v58  ;;  %v563_v43 = vmul.f32 %v561_v37, %v520_v57  ;;  %v564_v45 = vmul.f32 %v561_v37, %v521_v3  ;;  %v686_v58 = vld [vmem:[#allocation2 + $0xf8] sm:$0xff]  ;;  %v685_v57 = vld [vmem:[#allocation2 + $0xf0] sm:$0xff] }
 0x20a   :  { %v565_v52 = vmul.f32 %v561_v37, %v522_v2 }
 0x20b   :  { %v557_v40 = vsub.f32 %v2652_v48, %v555_v35 }
 0x20d   :  { %v569_v42 = vrot.slane %v557_v40, %v568_v39 }
 0x20f   :  { %v570_v46 = vadd.f32 %v569_v42, %v562_v41  ;;  %v571_v47 = vadd.f32 %v569_v42, %v563_v43  ;;  %v572_v51 = vadd.f32 %v569_v42, %v564_v45  ;;  %v573_v55 = vadd.f32 %v569_v42, %v565_v52 }
 0x211   :  { %v574_v53 = vmax.f32 %v570_v46, 0.0  ;;  %v575_v54 = vmax.f32 %v571_v47, 0.0  ;;  %v576_v56 = vmax.f32 %v572_v51, 0.0  ;;  %v577_v60 = vmax.f32 %v573_v55, 0.0 }
 0x213   :  { %2167 = vmatprep.mubr.f32.mxu0 %v574_v53 }
 0x214   :  { %2168 = vmatmul.mubr.f32.vlgmr.msra.gmra.mxu0 %v575_v54 }
 0x215   :  { %2212 = vmatpush3.msra.mxu0 %v2646_v27  ;;  %2170 = vmatprep.mubr.f32.mxu0 %v576_v56  ;;  %v691_v27 = vld [vmem:[#allocation2 + $0x120] sm:$0xff] }
 0x216   :  { %2213 = vmatprep.subr.mxu0 %v687_v59  ;;  %2199 = vmatprep.subr.mxu1 %v691_v27 }
 0x217   :  { %2214 = vmatpush3.msra.mxu0 %v687_v59  ;;  %2200 = vmatpush3.msra.mxu1 %v691_v27 }
 0x218   :  { %2215 = vmatprep.subr.mxu0 %v686_v58  ;;  %2171 = vmatmul.mubr.f32.gmra.mxu0 %v577_v60 }
 0x219   :  { %2216 = vmatpush3.msra.mxu0 %v686_v58  ;;  %2223 = vmatprep.mubr.msk.f32.mxu0 %vm52_vm0, %v2630_v5  ;;  %v690_v5 = vld [vmem:[#allocation2 + $0x118] sm:$0xff] }
 0x21a   :  { %2217 = vmatprep.subr.mxu0 %v685_v57  ;;  %2201 = vmatprep.subr.mxu1 %v690_v5 }
 0x21b   :  { %2218 = vmatpush3.msra.mxu0 %v685_v57  ;;  %2202 = vmatpush3.msra.mxu1 %v690_v5 }
 0x21c   :  { %2219 = vmatprep.subr.mxu0 %v684_v61  ;;  %2203 = vmatprep.subr.mxu1 %v689_v63 }
 0x21d   :  { %2220 = vmatpush3.msra.mxu0 %v684_v61  ;;  %2204 = vmatpush3.msra.mxu1 %v689_v63 }
 0x21e   :  { %2221 = vmatprep.subr.mxu0 %v683_v62  ;;  %2229 = vmatprep.subr.mxu1 %v952_v11 }
 0x21f   :  { %2222 = vmatpush3.msra.mxu0 %v683_v62 }
 0x220   :  { %2224 = vmatmul.mubr.msk.f32.vlgmr.msra.gmra.mxu0 %vm52_vm0, %v2626_v0  ;;  %v597_v0 = vrot.slane %v2652_v48, %v596_v1 }
 0x221   :  { %2226 = vmatprep.mubr.msk.f32.mxu0 %vm52_vm0, %v2638_v10 }
 0x224   :  { %2227 = vmatmul.mubr.msk.f32.gmra.mxu0 %vm52_vm0, %v2636_v8 }
 0x2d4   :  { %v2169_v2 = vpop.f32.mrf.mxu0 }
 0x2d5   :  { %v670_v4 = vadd.f32 %v2169_v2, %v597_v0 }
 0x2d6   :  { %v664_v10 = vpop.f32.mrf.mxu0 }
 0x2d7   :  { %v665_v3 = vadd.f32 %v664_v10, %v597_v0 }
 0x2d8   :  { %v2172_v8 = vpop.f32.mrf.mxu0 }
 0x2d9   :  { %2205 = vmatprep.mubr.f32.mxu1 %v665_v3  ;;  %v680_v9 = vadd.f32 %v2172_v8, %v597_v0 }
 0x2da   :  { %v674_v6 = vpop.f32.mrf.mxu0  ;;  %2206 = vmatmul.mubr.f32.vlgmr.msra.gmra.mxu1 %v670_v4 }
 0x2db   :  { %v675_v7 = vadd.f32 %v674_v6, %v597_v0  ;;  %2230 = vmatpush3.msra.mxu1 %v952_v11 }
 0x2dc   :  { %2231 = vmatprep.subr.mxu1 %v951_v12 }
 0x2dd   :  { %2208 = vmatprep.mubr.f32.mxu1 %v675_v7  ;;  %2232 = vmatpush3.msra.mxu1 %v951_v12 }
 0x2de   :  { %2209 = vmatmul.mubr.f32.gmra.mxu1 %v680_v9  ;;  %2233 = vmatprep.subr.mxu1 %v950_v13 }
 0x2df   :  { %2234 = vmatpush3.msra.mxu1 %v950_v13 }
 0x2e0   :  { %2235 = vmatprep.subr.mxu1 %v949_v14  ;;  %v2225_v28 = vpop.f32.mrf.mxu0 }
 0x2e1   :  { %2236 = vmatpush3.msra.mxu1 %v949_v14 }
 0x2e2   :  { %2237 = vmatprep.subr.mxu1 %v948_v15  ;;  %v856_v30 = vpop.f32.mrf.mxu0 }
 0x2e3   :  { %2238 = vmatpush3.msra.mxu1 %v948_v15 }
 0x2e4   :  { %2239 = vmatprep.subr.mxu1 %v947_v16  ;;  %v2228_v34 = vpop.f32.mrf.mxu0 }
 0x2e5   :  { %2240 = vmatpush3.msra.mxu1 %v947_v16 }
 0x2e6   :  { %2241 = vmatprep.subr.mxu1 %v946_v17  ;;  %v866_v45 = vpop.f32.mrf.mxu0 }
 0x2e7   :  { %2242 = vmatpush3.msra.mxu1 %v946_v17 }
 0x2e8   :  { %2243 = vmatprep.subr.mxu1 %v945_v18 }
 0x2e9   :  { %2244 = vmatpush3.msra.mxu1 %v945_v18  ;;  %v919_v18 = vsub.s32 5, %v2591_v36 }
 0x2ea   :  { %2245 = vmatprep.subr.mxu1 %v944_v19 }
 0x2eb   :  { %2246 = vmatpush3.msra.mxu1 %v944_v19 }
 0x2ec   :  { %2247 = vmatprep.subr.mxu1 %v943_v20 }
 0x2ed   :  { %2248 = vmatpush3.msra.mxu1 %v943_v20 }
 0x2ee   :  { %2249 = vmatprep.subr.mxu1 %v942_v21 }
 0x2ef   :  { %2250 = vmatpush3.msra.mxu1 %v942_v21 }
 0x2f0   :  { %2251 = vmatprep.subr.mxu1 %v941_v22 }
 0x2f1   :  { %2252 = vmatpush3.msra.mxu1 %v941_v22  ;;  %v927_v22 = vsub.s32 6, %v2591_v36 }
 0x2f2   :  { %2253 = vmatprep.subr.mxu1 %v940_v23 }
 0x2f3   :  { %2254 = vmatpush3.msra.mxu1 %v940_v23 }
 0x2f4   :  { %2255 = vmatprep.subr.mxu1 %v939_v24 }
 0x2f5   :  { %2256 = vmatpush3.msra.mxu1 %v939_v24 }
 0x2f6   :  { %2257 = vmatprep.subr.mxu1 %v938_v25 }
 0x2f7   :  { %2258 = vmatpush3.msra.mxu1 %v938_v25 }
 0x2f8   :  { %2259 = vmatprep.subr.mxu1 %v937_v26 }
 0x2f9   :  { %2260 = vmatpush3.msra.mxu1 %v937_v26 }
 0x39a   :  { %v2207_v31 = vpop.f32.mrf.mxu1 }
 0x39b   :  { %v862_v32 = vadd.f32 %v2225_v28, %v2207_v31 }
 0x39c   :  { %v771_v35 = vpop.f32.mrf.mxu1 }
 0x39d   :  { %v857_v37 = vadd.f32 %v856_v30, %v771_v35  ;;  %v880_v41 = vadd.f32 %v878_v33, %v862_v32 }
 0x39e   :  { %v2210_v40 = vpop.f32.mrf.mxu1 }
 0x39f   :  { %v879_v42 = vadd.f32 %v878_v33, %v857_v37  ;;  %v872_v43 = vadd.f32 %v2228_v34, %v2210_v40  ;;  %v894_v52 = vmul.f32 %v880_v41, %v880_v41 }
 0x3a0   :  { %v781_v46 = vpop.f32.mrf.mxu1 }
 0x3a1   :  { %v893_v47 = vmul.f32 %v879_v42, %v879_v42  ;;  %v867_v51 = vadd.f32 %v866_v45, %v781_v46  ;;  %v883_v53 = vadd.f32 %v880_v41, %v879_v42  ;;  %v882_v54 = vadd.f32 %v878_v33, %v872_v43  ;;  %v1157_v46 = vld [vmem:[%s2784_s4 + $0x8] sm:$0xff] }
 0x3a2   :  { %v2506_v45 = vmov 0  }
 0x3a3   :  { %v881_v55 = vadd.f32 %v878_v33, %v867_v51  ;;  %v897_v56 = vadd.f32 %v894_v52, %v893_v47  ;;  %v896_v60 = vmul.f32 %v882_v54, %v882_v54  ;;  %2447 = vset.pattern.permute.xlu1 %v2506_v45  ;;  %2448 = vset.pattern.permute.xlu0 %v2506_v45  ;;  %v1175_v47 = vld [vmem:[#allocation2 + $0x238] sm:$0xff]  ;;  %v1173_v51 = vld [vmem:[#allocation2 + $0x228] sm:$0xff]  ;;  %v1172_v52 = vld [vmem:[#allocation2 + $0x220] sm:$0xff] }
 0x3a4   :  { %2313 = vmatprep.subr.mxu1 %v1175_v47  ;;  %v1396_v45 = vld [vmem:[#allocation2 + $0x2c0] sm:$0xff] }
 0x3a5   :  { %v884_v59 = vadd.f32 %v883_v53, %v881_v55  ;;  %v895_v58 = vmul.f32 %v881_v55, %v881_v55  ;;  %v955_v53 = vsub.s32 7, %v2591_v36 }
 0x3a7   :  { %v885_v57 = vadd.f32 %v884_v59, %v882_v54  ;;  %v898_v61 = vadd.f32 %v897_v56, %v895_v58  ;;  %v956_v56 = vrot.slane %v2652_v48, %v955_v53 }
 0x3a9   :  { %v886_v62 = vrot.slane %v885_v57, 4  ;;  %v899_v27 = vadd.f32 %v898_v61, %v896_v60 }
 0x3ab   :  { %v887_v5 = vadd.f32 %v886_v62, %v885_v57  ;;  %v900_v63 = vrot.slane %v899_v27, 4 }
 0x3ad   :  { %v888_v0 = vrot.slane %v887_v5, 2  ;;  %v901_v2 = vadd.f32 %v900_v63, %v899_v27  ;;  %v1190_v63 = vld [vmem:[#allocation2 + $0x2b0] sm:$0xff] }
 0x3af   :  { %v889_v10 = vadd.f32 %v888_v0, %v887_v5  ;;  %v902_v3 = vrot.slane %v901_v2, 2  ;;  %v1191_v5 = vld [vmem:[#allocation2 + $0x2b8] sm:$0xff]  ;;  %v1188_v0 = vld [vmem:[#allocation2 + $0x2a0] sm:$0xff] }
 0x3b1   :  { %v890_v4 = vrot.slane %v889_v10, 1  ;;  %v903_v8 = vadd.f32 %v902_v3, %v901_v2  ;;  %v1187_v2 = vld [vmem:[#allocation2 + $0x298] sm:$0xff]  ;;  %v1185_v3 = vld [vmem:[#allocation2 + $0x288] sm:$0xff] }
 0x3b3   :  { %v891_v6 = vadd.f32 %v890_v4, %v889_v10  ;;  %v904_v7 = vrot.slane %v903_v8, 1  ;;  %v1186_v10 = vld [vmem:[#allocation2 + $0x290] sm:$0xff]  ;;  %v1184_v4 = vld [vmem:[#allocation2 + $0x280] sm:$0xff] }
 0x3b5   :  { %v892_v9 = vmul.f32 0.03125, %v891_v6  ;;  %v905_v11 = vadd.f32 %v904_v7, %v903_v8  ;;  %v1183_v8 = vld [vmem:[#allocation2 + $0x278] sm:$0xff]  ;;  %v1182_v6 = vld [vmem:[#allocation2 + $0x270] sm:$0xff]  ;;  %v1181_v7 = vld [vmem:[#allocation2 + $0x268] sm:$0xff] }
 0x3b7   :  { %v906_v12 = vmul.f32 0.03125, %v905_v11  ;;  %v907_v13 = vmul.f32 %v892_v9, %v892_v9  ;;  %v1179_v11 = vld [vmem:[#allocation2 + $0x258] sm:$0xff] }
 0x3b9   :  { %v908_v14 = vsub.f32 %v906_v12, %v907_v13  ;;  %v1178_v12 = vld [vmem:[#allocation2 + $0x250] sm:$0xff]  ;;  %v1171_v13 = vld [vmem:[#allocation2 + $0x218] sm:$0xff] }
 0x3bb   :  { %v909_v15 = vadd.f32 1e-05, %v908_v14  ;;  %v1177_v14 = vld [vmem:[#allocation2 + $0x248] sm:$0xff] }
 0x3bd   :  { %2453 = vrsqrt.f32 %v909_v15  ;;  %v1170_v15 = vld [vmem:[#allocation2 + $0x210] sm:$0xff] }
 0x3ca   :  { %v2454_v16 = vpop.eup %2453 }
 0x3cb   :  { %v911_v17 = vmul.f32 %v2454_v16, %v2652_v48  ;;  %v1176_v16 = vld [vmem:[#allocation2 + $0x240] sm:$0xff] }
 0x3cd   :  { %v912_v19 = vmul.f32 %v911_v17, %v892_v9  ;;  %v920_v21 = vrot.slane %v911_v17, %v919_v18  ;;  %v1180_v9 = vld [vmem:[#allocation2 + $0x260] sm:$0xff] }
 0x3cf   :  { %v914_v20 = vrot.slane %v912_v19, 7  ;;  %v921_v24 = vmul.f32 %v920_v21, %v879_v42  ;;  %v922_v26 = vmul.f32 %v920_v21, %v880_v41  ;;  %v923_v28 = vmul.f32 %v920_v21, %v881_v55  ;;  %v1058_v42 = vpop.trf.xlu0  ;;  %v1156_v41 = vld [vmem:[%s2784_s4] sm:$0xff] }
 0x3d0   :  { %v924_v33 = vmul.f32 %v920_v21, %v882_v54  ;;  %2275 = vmatprep.mubr.msk.f32.mxu0 %vm1074_vm2, %v1058_v42  ;;  %1160 = vperm.xlu1 %2447, %v1156_v41   ;;  %v1398_v42 = vld [vmem:[#allocation2 + $0x2d0] sm:$0xff]  ;;  %v1397_v41 = vld [vmem:[#allocation2 + $0x2c8] sm:$0xff] }
 0x3d1   :  { %v916_v23 = vsub.f32 %v2652_v48, %v914_v20  ;;  %v1189_v48 = vld [vmem:[#allocation2 + $0x2a8] sm:$0xff] }
 0x3d3   :  { %v928_v25 = vrot.slane %v916_v23, %v927_v22  ;;  %v1059_v27 = vpop.trf.xlu0 }
 0x3d4   :  { %1165 = vperm.xlu1 %2447, %v1157_v46   ;;  %v1885_v46 = vld [vmem:[%s2783_s3] sm:$0xff]  }
 0x3d5   :  { %v929_v30 = vadd.f32 %v928_v25, %v921_v24  ;;  %v930_v31 = vadd.f32 %v928_v25, %v922_v26  ;;  %v931_v32 = vadd.f32 %v928_v25, %v923_v28  ;;  %v932_v37 = vadd.f32 %v928_v25, %v924_v33  ;;  %v1411_v25 = vld [vmem:[#allocation2 + $0x338] sm:$0xff]  ;;  %v1410_v26 = vld [vmem:[#allocation2 + $0x330] sm:$0xff]  ;;  %v1409_v28 = vld [vmem:[#allocation2 + $0x328] sm:$0xff] }
 0x3d6   :  { %v1404_v33 = vld [vmem:[#allocation2 + $0x300] sm:$0xff] }
 0x3d7   :  { %v933_v34 = vmax.f32 %v929_v30, 0.0  ;;  %v934_v35 = vmax.f32 %v930_v31, 0.0  ;;  %v935_v40 = vmax.f32 %v931_v32, 0.0  ;;  %v936_v43 = vmax.f32 %v932_v37, 0.0  ;;  %v1408_v30 = vld [vmem:[#allocation2 + $0x320] sm:$0xff]  ;;  %v1406_v31 = vld [vmem:[#allocation2 + $0x310] sm:$0xff] }
 0x3d8   :  { %v1405_v32 = vld [vmem:[#allocation2 + $0x308] sm:$0xff] }
 0x3d9   :  { %2261 = vmatprep.mubr.f32.mxu1 %v933_v34  ;;  %v1403_v34 = vld [vmem:[#allocation2 + $0x2f8] sm:$0xff]  ;;  %v1401_v37 = vld [vmem:[#allocation2 + $0x2e8] sm:$0xff] }
 0x3da   :  { %2262 = vmatmul.mubr.f32.vlgmr.msra.gmra.mxu1 %v934_v35  ;;  %v1402_v35 = vld [vmem:[#allocation2 + $0x2f0] sm:$0xff] }
 0x3db   :  { %2264 = vmatprep.mubr.f32.mxu1 %v935_v40  ;;  %2314 = vmatpush3.msra.mxu1 %v1175_v47  ;;  %v1400_v40 = vld [vmem:[#allocation2 + $0x2e0] sm:$0xff]  ;;  %v1886_v47 = vunpack.c.l.bf16 %v1885_v46 }
 0x3de   :  { %2265 = vmatmul.mubr.f32.gmra.mxu1 %v936_v43  ;;  %v1399_v43 = vld [vmem:[#allocation2 + $0x2d8] sm:$0xff] }
 0x3df   :  { %2325 = vmatprep.mubr.msk.f32.mxu1 %vm52_vm0, %v2606_v50  ;;  %v1174_v50 = vld [vmem:[#allocation2 + $0x230] sm:$0xff] }
 0x3e0   :  { %2315 = vmatprep.subr.mxu1 %v1174_v50 }
 0x3e1   :  { %2316 = vmatpush3.msra.mxu1 %v1174_v50  ;;  %v1887_v50 = vunpack.c.h.bf16 %v1885_v46  ;;  %v1618_v46 = vld [vmem:[#allocation2 + $0x398] sm:$0xff] }
 0x3e2   :  { %2317 = vmatprep.subr.mxu1 %v1173_v51 }
 0x3e3   :  { %2318 = vmatpush3.msra.mxu1 %v1173_v51  ;;  %v2709_v51 = vld [vmem:[%s2788_s8 + $0x8] sm:$0xff] }
 0x3e4   :  { %2319 = vmatprep.subr.mxu1 %v1172_v52 }
 0x3e5   :  { %2320 = vmatpush3.msra.mxu1 %v1172_v52 }
 0x3e6   :  { %2321 = vmatprep.subr.mxu1 %v1171_v13 }
 0x3e7   :  { %2322 = vmatpush3.msra.mxu1 %v1171_v13 }
 0x3e8   :  { %2323 = vmatprep.subr.mxu1 %v1170_v15 }
 0x3e9   :  { %2324 = vmatpush3.msra.mxu1 %v1170_v15 }
 0x3ea   :  { %2326 = vmatmul.mubr.msk.f32.vlgmr.msra.gmra.mxu1 %vm52_vm0, %v2604_v49  ;;  %2328 = vmatprep.subr.mxu1 %v1411_v25  ;;  %v1407_v49 = vld [vmem:[#allocation2 + $0x318] sm:$0xff] }
 0x3eb   :  { %2329 = vmatpush3.msra.mxu1 %v1411_v25 }
 0x3ec   :  { %2330 = vmatprep.subr.mxu1 %v1410_v26 }
 0x3ed   :  { %2331 = vmatpush3.msra.mxu1 %v1410_v26 }
 0x3ee   :  { %2332 = vmatprep.subr.mxu1 %v1409_v28 }
 0x3ef   :  { %2333 = vmatpush3.msra.mxu1 %v1409_v28 }
 0x3f0   :  { %2334 = vmatprep.subr.mxu1 %v1408_v30 }
 0x3f1   :  { %2335 = vmatpush3.msra.mxu1 %v1408_v30 }
 0x3f2   :  { %2336 = vmatprep.subr.mxu1 %v1407_v49 }
 0x3f3   :  { %2337 = vmatpush3.msra.mxu1 %v1407_v49 }
 0x3f4   :  { %2338 = vmatprep.subr.mxu1 %v1406_v31 }
 0x3f5   :  { %2339 = vmatpush3.msra.mxu1 %v1406_v31 }
 0x3f6   :  { %2340 = vmatprep.subr.mxu1 %v1405_v32 }
 0x3f7   :  { %2341 = vmatpush3.msra.mxu1 %v1405_v32 }
 0x3f8   :  { %2342 = vmatprep.subr.mxu1 %v1404_v33 }
 0x3f9   :  { %2343 = vmatpush3.msra.mxu1 %v1404_v33  ;;  %v2507_v33 = vmov 0.0  }
 0x3fa   :  { %2344 = vmatprep.subr.mxu1 %v1403_v34 }
 0x3fb   :  { %2345 = vmatpush3.msra.mxu1 %v1403_v34 }
 0x3fc   :  { %2346 = vmatprep.subr.mxu1 %v1402_v35 }
 0x3fd   :  { %2347 = vmatpush3.msra.mxu1 %v1402_v35  ;;  %1495 = vxpose.xlu1.b32.start [1/2] (short) (narrow) %v1886_v47, 8  ;;  %v1617_v47 = vld [vmem:[#allocation2 + $0x390] sm:$0xff] }
 0x3fe   :  { %2348 = vmatprep.subr.mxu1 %v1401_v37 }
 0x3ff   :  { %2349 = vmatpush3.msra.mxu1 %v1401_v37 }
 0x400   :  { %2350 = vmatprep.subr.mxu1 %v1400_v40 }
 0x401   :  { %2351 = vmatpush3.msra.mxu1 %v1400_v40  ;;  %1496 = vxpose.xlu1.b32.end [2/2] (short) (narrow) %v1887_v50, 8  ;;  %v1616_v50 = vld [vmem:[#allocation2 + $0x388] sm:$0xff] }
 0x402   :  { %2352 = vmatprep.subr.mxu1 %v1399_v43 }
 0x403   :  { %2353 = vmatpush3.msra.mxu1 %v1399_v43 }
 0x404   :  { %2354 = vmatprep.subr.mxu1 %v1398_v42 }
 0x405   :  { %2355 = vmatpush3.msra.mxu1 %v1398_v42  ;;  %v1622_v42 = vld [vmem:[#allocation2 + $0x3b8] sm:$0xff] }
 0x406   :  { %2356 = vmatprep.subr.mxu1 %v1397_v41 }
 0x407   :  { %2357 = vmatpush3.msra.mxu1 %v1397_v41  ;;  %v1621_v41 = vld [vmem:[#allocation2 + $0x3b0] sm:$0xff] }
 0x408   :  { %2358 = vmatprep.subr.mxu1 %v1396_v45 }
 0x409   :  { %2359 = vmatpush3.msra.mxu1 %v1396_v45  ;;  %v1619_v45 = vld [vmem:[#allocation2 + $0x3a0] sm:$0xff] }
 0x40a   :  { %2405 = vmatprep.subr.mxu1 %v2507_v33 }
 0x44b   :  { %v1161_v17 = vpop.permute.xlu1 %1160 }
 0x44f   :  { %v1166_v20 = vpop.permute.xlu1 %1165 }
 0x479   :  { %v1511_v43 = vpop.trf.xlu1 }
 0x49a   :  { %v2263_v54 = vpop.f32.mrf.mxu1 }
 0x49b   :  { %v1029_v61 = vadd.f32 %v2263_v54, %v956_v56  ;;  %v1351_v54 = vrot.slane %v2709_v51, %v2597_v38 }
 0x49c   :  { %v1023_v55 = vpop.f32.mrf.mxu1 }
 0x49d   :  { %v1024_v62 = vadd.f32 %v1023_v55, %v956_v56 }
 0x49e   :  { %v2266_v59 = vpop.f32.mrf.mxu1 }
 0x49f   :  { %v1039_v58 = vadd.f32 %v2266_v59, %v956_v56 }
 0x4a0   :  { %v1033_v60 = vpop.f32.mrf.mxu1 }
 0x4a1   :  { %v1034_v57 = vadd.f32 %v1033_v60, %v956_v56  ;;  %2267 = vmatprep.subr.mxu0 %v1039_v58 }
 0x4a2   :  { %2268 = vmatpush3.msra.mxu0 %v1039_v58 }
 0x4a3   :  { %2269 = vmatprep.subr.mxu0 %v1034_v57 }
 0x4a4   :  { %2270 = vmatpush3.msra.mxu0 %v1034_v57 }
 0x4a5   :  { %2271 = vmatprep.subr.mxu0 %v1029_v61 }
 0x4a6   :  { %2272 = vmatpush3.msra.mxu0 %v1029_v61 }
 0x4a7   :  { %2273 = vmatprep.subr.mxu0 %v1024_v62 }
 0x4a8   :  { %2274 = vmatpush3.msra.mxu0 %v1024_v62 }
 0x4a9   :  { %2276 = vmatmul.mubr.msk.f32.vlgmr.msra.gmra.mxu0 %vm1074_vm2, %v1059_v27  ;;  %2278 = vmatprep.subr.mxu0 %v1191_v5 }
 0x4aa   :  { %2279 = vmatpush3.msra.mxu0 %v1191_v5  ;;  %v2327_v52 = vpop.f32.mrf.mxu1 }
 0x4ab   :  { %2280 = vmatprep.subr.mxu0 %v1190_v63 }
 0x4ac   :  { %2281 = vmatpush3.msra.mxu0 %v1190_v63  ;;  %v1339_v59 = vpop.f32.mrf.mxu1 }
 0x4ad   :  { %2282 = vmatprep.subr.mxu0 %v1189_v48 }
 0x4ae   :  { %2283 = vmatpush3.msra.mxu0 %v1189_v48 }
 0x4af   :  { %2284 = vmatprep.subr.mxu0 %v1188_v0 }
 0x4b0   :  { %2285 = vmatpush3.msra.mxu0 %v1188_v0 }
 0x4b1   :  { %2286 = vmatprep.subr.mxu0 %v1187_v2 }
 0x4b2   :  { %2287 = vmatpush3.msra.mxu0 %v1187_v2 }
 0x4b3   :  { %2288 = vmatprep.subr.mxu0 %v1186_v10 }
 0x4b4   :  { %2289 = vmatpush3.msra.mxu0 %v1186_v10 }
 0x4b5   :  { %2290 = vmatprep.subr.mxu0 %v1185_v3 }
 0x4b6   :  { %2291 = vmatpush3.msra.mxu0 %v1185_v3 }
 0x4b7   :  { %2292 = vmatprep.subr.mxu0 %v1184_v4 }
 0x4b8   :  { %2293 = vmatpush3.msra.mxu0 %v1184_v4 }
 0x4b9   :  { %2294 = vmatprep.subr.mxu0 %v1183_v8 }
 0x4ba   :  { %2295 = vmatpush3.msra.mxu0 %v1183_v8 }
 0x4bb   :  { %2296 = vmatprep.subr.mxu0 %v1182_v6 }
 0x4bc   :  { %2297 = vmatpush3.msra.mxu0 %v1182_v6 }
 0x4bd   :  { %2298 = vmatprep.subr.mxu0 %v1181_v7 }
 0x4be   :  { %2299 = vmatpush3.msra.mxu0 %v1181_v7 }
 0x4bf   :  { %2300 = vmatprep.subr.mxu0 %v1180_v9 }
 0x4c0   :  { %2301 = vmatpush3.msra.mxu0 %v1180_v9 }
 0x4c1   :  { %2302 = vmatprep.subr.mxu0 %v1179_v11 }
 0x4c2   :  { %2303 = vmatpush3.msra.mxu0 %v1179_v11 }
 0x4c3   :  { %2304 = vmatprep.subr.mxu0 %v1178_v12 }
 0x4c4   :  { %2305 = vmatpush3.msra.mxu0 %v1178_v12 }
 0x4c5   :  { %2306 = vmatprep.subr.mxu0 %v1177_v14 }
 0x4c6   :  { %2307 = vmatpush3.msra.mxu0 %v1177_v14 }
 0x4c7   :  { %2308 = vmatprep.subr.mxu0 %v1176_v16 }
 0x4c8   :  { %2309 = vmatpush3.msra.mxu0 %v1176_v16 }
 0x4c9   :  { %2363 = vmatprep.subr.mxu0 %v2507_v33 }
 0x569   :  { %v2277_v19 = vpop.f32.mrf.mxu0 }
 0x56a   :  { %v1169_v24 = vmul.f32 %v2277_v19, %v1166_v20 }
 0x56b   :  { %v1147_v21 = vpop.f32.mrf.mxu0 }
 0x56c   :  { %v1168_v23 = vmul.f32 %v1161_v17, %v1147_v21 }
 0x56e   :  { %2310 = vmatprep.mubr.f32.mxu0 %v1168_v23 }
 0x56f   :  { %2311 = vmatmul.mubr.f32.vlgmr.msra.gmra.mxu0 %v1169_v24 }
 0x570   :  { %2367 = vmatprep.mubr.msk.f32.mxu0 %vm2508_vm3, %v2507_v33 }
 0x62f   :  { %v2312_v55 = vpop.f32.mrf.mxu0 }
 0x630   :  { %v1345_v56 = vadd.f32 %v2327_v52, %v2312_v55  ;;  %v1615_v52 = vld [vmem:[#allocation2 + $0x380] sm:$0xff]  ;;  %v1613_v55 = vld [vmem:[#allocation2 + $0x370] sm:$0xff] }
 0x631   :  { %v1258_v58 = vpop.f32.mrf.mxu0 }
 0x632   :  { %v1353_v60 = vadd.f32 %v1351_v54, %v1345_v56  ;;  %v1340_v57 = vadd.f32 %v1339_v59, %v1258_v58  ;;  %v1612_v56 = vld [vmem:[#allocation2 + $0x368] sm:$0xff]  ;;  %v1611_v59 = vld [vmem:[#allocation2 + $0x360] sm:$0xff]  ;;  %v1610_v58 = vld [vmem:[#allocation2 + $0x358] sm:$0xff] }
 0x634   :  { %v1352_v61 = vadd.f32 %v1351_v54, %v1340_v57  ;;  %v1363_v62 = vmul.f32 %v1353_v60, %v1353_v60  ;;  %v1614_v54 = vld [vmem:[#allocation2 + $0x378] sm:$0xff]  ;;  %v1608_v57 = vld [vmem:[#allocation2 + $0x348] sm:$0xff] }
 0x636   :  { %v1354_v27 = vadd.f32 %v1353_v60, %v1352_v61  ;;  %v1362_v5 = vmul.f32 %v1352_v61, %v1352_v61 }
 0x638   :  { %v1355_v63 = vrot.slane %v1354_v27, 4  ;;  %v1364_v48 = vadd.f32 %v1363_v62, %v1362_v5 }
 0x63a   :  { %v1356_v0 = vadd.f32 %v1355_v63, %v1354_v27  ;;  %v1365_v2 = vrot.slane %v1364_v48, 4 }
 0x63c   :  { %v1357_v10 = vrot.slane %v1356_v0, 2  ;;  %v1366_v3 = vadd.f32 %v1365_v2, %v1364_v48  ;;  %v1752_v48 = vld [vmem:[#allocation2 + $0x438] sm:$0xff]  ;;  %v1750_v2 = vld [vmem:[#allocation2 + $0x428] sm:$0xff] }
 0x63e   :  { %v1358_v4 = vadd.f32 %v1357_v10, %v1356_v0  ;;  %v1367_v8 = vrot.slane %v1366_v3, 2  ;;  %v1751_v0 = vld [vmem:[#allocation2 + $0x430] sm:$0xff]  ;;  %v1749_v10 = vld [vmem:[#allocation2 + $0x420] sm:$0xff] }
 0x640   :  { %v1359_v6 = vrot.slane %v1358_v4, 1  ;;  %v1368_v38 = vadd.f32 %v1367_v8, %v1366_v3  ;;  %v1748_v3 = vld [vmem:[#allocation2 + $0x418] sm:$0xff]  ;;  %v1746_v8 = vld [vmem:[#allocation2 + $0x408] sm:$0xff] }
 0x642   :  { %v1360_v7 = vadd.f32 %v1359_v6, %v1358_v4  ;;  %v1369_v9 = vrot.slane %v1368_v38, 1  ;;  %v1747_v4 = vld [vmem:[#allocation2 + $0x410] sm:$0xff]  ;;  %v1745_v6 = vld [vmem:[#allocation2 + $0x400] sm:$0xff] }
 0x644   :  { %v1370_v11 = vadd.f32 %v1369_v9, %v1368_v38  ;;  %v1361_v12 = vmul.f32 0.0625, %v1360_v7  ;;  %v1744_v38 = vld [vmem:[#allocation2 + $0x3f8] sm:$0xff]  ;;  %v1743_v7 = vld [vmem:[#allocation2 + $0x3f0] sm:$0xff]  ;;  %v1742_v9 = vld [vmem:[#allocation2 + $0x3e8] sm:$0xff] }
 0x646   :  { %v1371_v13 = vmul.f32 0.0625, %v1370_v11  ;;  %v1372_v14 = vmul.f32 %v1361_v12, %v1361_v12  ;;  %v1741_v11 = vld [vmem:[#allocation2 + $0x3e0] sm:$0xff] }
 0x648   :  { %v1373_v15 = vsub.f32 %v1371_v13, %v1372_v14  ;;  %v1739_v13 = vld [vmem:[#allocation2 + $0x3d0] sm:$0xff]  ;;  %v1738_v14 = vld [vmem:[#allocation2 + $0x3c8] sm:$0xff] }
 0x64a   :  { %v1374_v16 = vadd.f32 1e-05, %v1373_v15  ;;  %v1737_v15 = vld [vmem:[#allocation2 + $0x3c0] sm:$0xff] }
 0x64c   :  { %2455 = vrsqrt.f32 %v1374_v16  ;;  %v1626_v16 = vrot.slane %v2709_v51, %v877_v29 }
 0x659   :  { %v2456_v17 = vpop.eup %2455 }
 0x65a   :  { %v1376_v19 = vmul.f32 %v2456_v17, %v2709_v51 }
 0x65c   :  { %v1377_v20 = vmul.f32 %v1376_v19, %v1361_v12  ;;  %v1385_v23 = vrot.slane %v1376_v19, %v2601_v44  ;;  %v1600_v44 = vld [vmem:[%s2785_s5] sm:$0x3]  ;;  %v1740_v12 = vld [vmem:[#allocation2 + $0x3d8] sm:$0xff]  ;;  %s2509_s5 = smov [#allocation5]  }
 0x65d   :  { %1603 = vperm.xlu0 %2448, %v1600_v44   ;;  %s1834_s13 = sshll.u32 %s2509_s5, 4  ;;  %s1835_s13 = int_to_ptr.vmem [resolvable:$true] %s1834_s13 }
 0x65e   :  { %v1379_v21 = vrot.slane %v1377_v20, 7  ;;  %v1386_v25 = vmul.f32 %v1385_v23, %v1352_v61  ;;  %v1387_v28 = vmul.f32 %v1385_v23, %v1353_v60  ;;  %v1609_v60 = vld [vmem:[#allocation2 + $0x350] sm:$0xff]  ;;  %v1607_v61 = vld [vmem:[#allocation2 + $0x340] sm:$0xff]  ;;  %s2479_s14 = scalar_lea.vmem %s1835_s13, 32  ;;  %p2484_p6 = scmp.lt.s32.totalorder %s1835_s13, %s1835_s13 }
 0x65f   :  { %p2480_p5 = scmp.ne.s32.totalorder %s1835_s13, %s2479_s14  ;;  %p2485_p7 = scmp.lt.s32.totalorder %s2479_s14, %s2479_s14 }
 0x660   :  { %v1381_v24 = vsub.f32 %v2709_v51, %v1379_v21 }
 0x661   :  { %p2486_p8 = por %p2485_p7, %p2484_p6 }
 0x662   :  { %v1391_v26 = vrot.slane %v1381_v24, %v568_v39  ;;  %v1415_v39 = vrot.slane %v2709_v51, %v596_v1  ;;  %v1620_v1 = vld [vmem:[#allocation2 + $0x3a8] sm:$0xff] }
 0x663   :  { %p2487_p9 = pnand %p2486_p8, %p2480_p5 }
 0x664   :  { %v1392_v30 = vadd.f32 %v1391_v26, %v1386_v25  ;;  %v1393_v49 = vadd.f32 %v1391_v26, %v1387_v28 }
 0x666   :  { %v1394_v31 = vmax.f32 %v1392_v30, 0.0  ;;  %v1395_v32 = vmax.f32 %v1393_v49, 0.0 }
 0x668   :  { %2360 = vmatprep.mubr.f32.mxu1 %v1394_v31 }
 0x669   :  { %2361 = vmatmul.mubr.f32.vlgmr.msra.gmra.mxu1 %v1395_v32 }
 0x66a   :  { %2437 = vmatprep.mubr.msk.f32.mxu1 %vm2508_vm3, %v2507_v33  ;;  %2406 = vmatpush3.msra.mxu1 %v1752_v48 }
 0x66b   :  { %2407 = vmatprep.subr.mxu1 %v2507_v33 }
 0x66c   :  { %2408 = vmatpush3.msra.mxu1 %v1751_v0 }
 0x66d   :  { %2409 = vmatprep.subr.mxu1 %v2507_v33 }
 0x66e   :  { %2410 = vmatpush3.msra.mxu1 %v1750_v2 }
 0x66f   :  { %2411 = vmatprep.subr.mxu1 %v2507_v33 }
 0x670   :  { %2412 = vmatpush3.msra.mxu1 %v1749_v10 }
 0x671   :  { %2413 = vmatprep.subr.mxu1 %v2507_v33 }
 0x672   :  { %2414 = vmatpush3.msra.mxu1 %v1748_v3 }
 0x673   :  { %2415 = vmatprep.subr.mxu1 %v2507_v33 }
 0x674   :  { %2416 = vmatpush3.msra.mxu1 %v1747_v4 }
 0x675   :  { %2417 = vmatprep.subr.mxu1 %v2507_v33 }
 0x676   :  { %2418 = vmatpush3.msra.mxu1 %v1746_v8 }
 0x677   :  { %2419 = vmatprep.subr.mxu1 %v2507_v33 }
 0x678   :  { %2420 = vmatpush3.msra.mxu1 %v1745_v6 }
 0x679   :  { %2421 = vmatprep.subr.mxu1 %v2507_v33 }
 0x67a   :  { %2422 = vmatpush3.msra.mxu1 %v1744_v38 }
 0x67b   :  { %2423 = vmatprep.subr.mxu1 %v2507_v33 }
 0x67c   :  { %2424 = vmatpush3.msra.mxu1 %v1743_v7 }
 0x67d   :  { %2425 = vmatprep.subr.mxu1 %v2507_v33 }
 0x67e   :  { %2426 = vmatpush3.msra.mxu1 %v1742_v9 }
 0x67f   :  { %2427 = vmatprep.subr.mxu1 %v2507_v33 }
 0x680   :  { %2428 = vmatpush3.msra.mxu1 %v1741_v11 }
 0x681   :  { %2429 = vmatprep.subr.mxu1 %v2507_v33 }
 0x682   :  { %2430 = vmatpush3.msra.mxu1 %v1740_v12 }
 0x683   :  { %2431 = vmatprep.subr.mxu1 %v2507_v33 }
 0x684   :  { %2432 = vmatpush3.msra.mxu1 %v1739_v13 }
 0x685   :  { %2433 = vmatprep.subr.mxu1 %v2507_v33 }
 0x686   :  { %2434 = vmatpush3.msra.mxu1 %v1738_v14 }
 0x687   :  { %2435 = vmatprep.subr.mxu1 %v2507_v33 }
 0x688   :  { %2436 = vmatpush3.msra.mxu1 %v1737_v15 }
 0x6d8   :  { %v1604_v62 = vpop.permute.xlu0 %1603 }
 0x729   :  { %v2362_v34 = vpop.f32.mrf.mxu1 }
 0x72a   :  { %v1488_v35 = vadd.f32 %v2362_v34, %v1415_v39 }
 0x72b   :  { %v1482_v37 = vpop.f32.mrf.mxu1 }
 0x72c   :  { %v1483_v40 = vadd.f32 %v1482_v37, %v1415_v39  ;;  %2364 = vmatpush3.msra.mxu0 %v1488_v35 }
 0x72d   :  { %2365 = vmatprep.subr.mxu0 %v2507_v33 }
 0x72e   :  { %2366 = vmatpush3.msra.mxu0 %v1483_v40 }
 0x72f   :  { %2368 = vmatmul.mubr.msk.f32.vlgmr.msra.gmra.mxu0 %vm114_vm1, %v1511_v43  ;;  %2370 = vmatprep.subr.mxu0 %v2507_v33 }
 0x730   :  { %2371 = vmatpush3.msra.mxu0 %v1622_v42  ;;  %2402 = vmatprep.mubr.msk.f32.mxu0 %vm2508_vm3, %v2507_v33 }
 0x731   :  { %2372 = vmatprep.subr.mxu0 %v2507_v33 }
 0x732   :  { %2373 = vmatpush3.msra.mxu0 %v1621_v41 }
 0x733   :  { %2374 = vmatprep.subr.mxu0 %v2507_v33 }
 0x734   :  { %2375 = vmatpush3.msra.mxu0 %v1620_v1 }
 0x735   :  { %2376 = vmatprep.subr.mxu0 %v2507_v33 }
 0x736   :  { %2377 = vmatpush3.msra.mxu0 %v1619_v45 }
 0x737   :  { %2378 = vmatprep.subr.mxu0 %v2507_v33 }
 0x738   :  { %2379 = vmatpush3.msra.mxu0 %v1618_v46 }
 0x739   :  { %2380 = vmatprep.subr.mxu0 %v2507_v33 }
 0x73a   :  { %2381 = vmatpush3.msra.mxu0 %v1617_v47 }
 0x73b   :  { %2382 = vmatprep.subr.mxu0 %v2507_v33 }
 0x73c   :  { %2383 = vmatpush3.msra.mxu0 %v1616_v50 }
 0x73d   :  { %2384 = vmatprep.subr.mxu0 %v2507_v33 }
 0x73e   :  { %2385 = vmatpush3.msra.mxu0 %v1615_v52 }
 0x73f   :  { %2386 = vmatprep.subr.mxu0 %v2507_v33 }
 0x740   :  { %2387 = vmatpush3.msra.mxu0 %v1614_v54 }
 0x741   :  { %2388 = vmatprep.subr.mxu0 %v2507_v33 }
 0x742   :  { %2389 = vmatpush3.msra.mxu0 %v1613_v55 }
 0x743   :  { %2390 = vmatprep.subr.mxu0 %v2507_v33 }
 0x744   :  { %2391 = vmatpush3.msra.mxu0 %v1612_v56 }
 0x745   :  { %2392 = vmatprep.subr.mxu0 %v2507_v33 }
 0x746   :  { %2393 = vmatpush3.msra.mxu0 %v1611_v59  ;;  %v1756_v59 = vrot.slane %v2709_v51, %v955_v53 }
 0x747   :  { %2394 = vmatprep.subr.mxu0 %v2507_v33 }
 0x748   :  { %2395 = vmatpush3.msra.mxu0 %v1610_v58 }
 0x749   :  { %2396 = vmatprep.subr.mxu0 %v2507_v33 }
 0x74a   :  { %2397 = vmatpush3.msra.mxu0 %v1609_v60 }
 0x74b   :  { %2398 = vmatprep.subr.mxu0 %v2507_v33 }
 0x74c   :  { %2399 = vmatpush3.msra.mxu0 %v1608_v57 }
 0x74d   :  { %2400 = vmatprep.subr.mxu0 %v2507_v33 }
 0x74e   :  { %2401 = vmatpush3.msra.mxu0 %v1607_v61 }
 0x7ef   :  { %v1596_v27 = vpop.f32.mrf.mxu0 }
 0x7f0   :  { %v1606_v5 = vmul.f32 %v1604_v62, %v1596_v27 }
 0x7f1   :  { %v2369_v63 = vpop.f32.mrf.mxu0 }
 0x7f2   :  { %2403 = vmatmul.mubr.f32.vlgmr.msra.gmra.mxu0 %v1606_v5 }
 0x8b2   :  { %v1693_v17 = vpop.f32.mrf.mxu0 }
 0x8b3   :  { %v1694_v19 = vadd.f32 %v1693_v17, %v1626_v16 }
 0x8b4   :  { %v2404_v20 = vpop.f32.mrf.mxu0 }
 0x8b5   :  { %v1698_v21 = vsel %vm1697_vm4, %v1694_v19, 0.0  ;;  %v1707_v23 = vmul.f32 %v1694_v19, %v1694_v19 }
 0x8b6   :  { %v1699_v24 = vrot.slane %v1698_v21, 4 }
 0x8b7   :  { %v1708_v25 = vsel %vm1697_vm4, %v1707_v23, 0.0 }
 0x8b8   :  { %v1700_v26 = vadd.f32 %v1699_v24, %v1698_v21  ;;  %v1709_v28 = vrot.slane %v1708_v25, 4 }
 0x8ba   :  { %v1701_v30 = vrot.slane %v1700_v26, 2  ;;  %v1710_v49 = vadd.f32 %v1709_v28, %v1708_v25 }
 0x8bc   :  { %v1702_v31 = vadd.f32 %v1701_v30, %v1700_v26  ;;  %v1711_v32 = vrot.slane %v1710_v49, 2 }
 0x8be   :  { %v1703_v33 = vrot.slane %v1702_v31, 1  ;;  %v1712_v44 = vadd.f32 %v1711_v32, %v1710_v49 }
 0x8c0   :  { %v1704_v39 = vadd.f32 %v1703_v33, %v1702_v31  ;;  %v1713_v34 = vrot.slane %v1712_v44, 1 }
 0x8c2   :  { %v1706_v35 = vmul.f32 0.5, %v1704_v39  ;;  %v1714_v29 = vadd.f32 %v1713_v34, %v1712_v44 }
 0x8c4   :  { %v1715_v37 = vmul.f32 0.5, %v1714_v29  ;;  %v1716_v40 = vmul.f32 %v1706_v35, %v1706_v35 }
 0x8c6   :  { %v1717_v43 = vsub.f32 %v1715_v37, %v1716_v40 }
 0x8c8   :  { %v1718_v42 = vadd.f32 1e-05, %v1717_v43 }
 0x8ca   :  { %2457 = vrsqrt.f32 %v1718_v42 }
 0x8d7   :  { %v2458_v41 = vpop.eup %2457 }
 0x8d8   :  { %v1720_v1 = vmul.f32 %v2458_v41, %v2709_v51 }
 0x8da   :  { %v1721_v45 = vmul.f32 %v1720_v1, %v1706_v35  ;;  %v1729_v47 = vrot.slane %v1720_v1, %v919_v18 }
 0x8dc   :  { %v1723_v46 = vrot.slane %v1721_v45, 7  ;;  %v1730_v52 = vmul.f32 %v1729_v47, %v1694_v19 }
 0x8de   :  { %v1725_v50 = vsub.f32 %v2709_v51, %v1723_v46 }
 0x8e0   :  { %v1734_v54 = vrot.slane %v1725_v50, %v927_v22 }
 0x8e2   :  { %v1735_v55 = vadd.f32 %v1734_v54, %v1730_v52 }
 0x8e4   :  { %v1736_v56 = vmax.f32 %v1735_v55, 0.0 }
 0x8e6   :  { %2438 = vmatmul.mubr.f32.vlgmr.msra.gmra.mxu1 %v1736_v56 }
 0x9a6   :  { %v1823_v58 = vpop.f32.mrf.mxu1 }
 0x9a7   :  { %v1824_v60 = vadd.f32 %v1823_v58, %v1756_v59 }
 0x9a8   :  { %v2439_v57 = vpop.f32.mrf.mxu1 }
 0x9a9   :  { %1827 = vst [vmem:[#allocation5] sm:$0x3] %v1824_v60 }
 0x9aa   :  { %2490 = shalt.err (!%p2487_p9)
}
 0x9ab   :  { %1837 = dma.vmem_to_hbm [thread:$0]  %s1835_s13, 32, %s2789_s9, [#allocation4]  }
 0x9ac   :  { %2501 = dma.done.wait [#allocation4], 32  }
 0x9ad   :  { %2502 = vsyncadd [#allocation4], 4294967264 }
 0x9ae   :  { %1841 = vsyncpa [#allocation3], 1 }
 0x9af   :  { %1842 = vsyncpa [#allocation4], 1 }

</bundles_post_ra>
